<compile_context>
chip_gen: v7x
topology: tpu7x:2x2x1
jax: 0.10.0
libtpu: 0.0.40
codegen_flags: <defaults>
</compile_context>

<pallas_src>
import jax
import jax.numpy as jnp
from jax import lax
from jax.experimental import pallas as pl
from jax.experimental.pallas import tpu as pltpu

# LeNet static config (PyTorch module defaults: inputChannel=6, cls_num=8;
# fc1's 16*5*5 fan-in implies a 32x32 spatial input).
IN_C, IN_H, IN_W = 6, 32, 32
K = 5                                   # conv kernel size
C1_O, C1_HO, C1_WO = 6, 28, 28          # conv1 output
P1_H, P1_W = 14, 14                     # after 2x2 max pool
C2_O, C2_HO, C2_WO = 16, 10, 10         # conv2 output
P2_H, P2_W = 5, 5                       # after 2x2 max pool
FC1_N, FC2_N, CLS = 128, 64, 8


# ----------------------------------------------------------------------------
# The fused kernel (runs once per batch sample; grid=(B,))
# ----------------------------------------------------------------------------
def _lenet_kernel(x_ref,
                  wt1_ref, b1_ref, s1w_ref, s1h_ref,
                  wt2_ref, b2_ref, s2w_ref, s2h_ref,
                  wfc1_ref, bfc1_ref, wfc2_ref, bfc2_ref, wfc3_ref, bfc3_ref,
                  o_ref):
    f32 = jnp.float32
    x = x_ref[0]                                   # (32, 6*32), columns (c, w)

    # ---- conv1 (5x5, 6->6): 5 row-shifted matmuls vs Toeplitz weight slabs ----
    acc = jnp.dot(x[0:C1_HO, :], wt1_ref[0], preferred_element_type=f32)
    for di in range(1, K):
        acc = acc + jnp.dot(x[di:di + C1_HO, :], wt1_ref[di],
                            preferred_element_type=f32)
    y1 = jnp.maximum(acc + b1_ref[...], 0.0)       # (28, 6*28), columns (o, j)

    # ---- fused 2x2 max pool: pairwise max + 0/1 selection matmuls ----
    n1 = C1_O * C1_WO
    wmax = jnp.maximum(y1[:, 0:n1 - 1], y1[:, 1:n1])                  # (28, 167)
    z1 = jnp.dot(wmax, s1w_ref[...], preferred_element_type=f32)      # (28, 84)
    hmax = jnp.maximum(z1[0:C1_HO - 1, :], z1[1:C1_HO, :])            # (27, 84)
    p1 = jnp.dot(s1h_ref[...], hmax, preferred_element_type=f32)      # (14, 84)

    # ---- conv2 (5x5, 6->16) ----
    acc = jnp.dot(p1[0:C2_HO, :], wt2_ref[0], preferred_element_type=f32)
    for di in range(1, K):
        acc = acc + jnp.dot(p1[di:di + C2_HO, :], wt2_ref[di],
                            preferred_element_type=f32)
    y2 = jnp.maximum(acc + b2_ref[...], 0.0)       # (10, 16*10), columns (o, j)

    n2 = C2_O * C2_WO
    wmax2 = jnp.maximum(y2[:, 0:n2 - 1], y2[:, 1:n2])                 # (10, 159)
    z2 = jnp.dot(wmax2, s2w_ref[...], preferred_element_type=f32)     # (10, 80)
    hmax2 = jnp.maximum(z2[0:C2_HO - 1, :], z2[1:C2_HO, :])           # (9, 80)
    p2 = jnp.dot(s2h_ref[...], hmax2, preferred_element_type=f32)     # (5, 80)

    # ---- fc1 (400->128): contraction split over the 5 pooled rows, the torch
    #      (C,H,W) flatten permutation is pre-folded into wfc1 ----
    h = jnp.dot(p2[0:1, :], wfc1_ref[0], preferred_element_type=f32)
    for p in range(1, P2_H):
        h = h + jnp.dot(p2[p:p + 1, :], wfc1_ref[p], preferred_element_type=f32)
    h = jnp.maximum(h + bfc1_ref[...], 0.0)                           # (1, 128)

    # ---- fc2 + relu ----
    h = jnp.maximum(jnp.dot(h, wfc2_ref[...], preferred_element_type=f32)
                    + bfc2_ref[...], 0.0)                             # (1, 64)

    # ---- fc3 + softmax ----
    logits = (jnp.dot(h, wfc3_ref[...], preferred_element_type=f32)
              + bfc3_ref[...])                                        # (1, 8)
    m = jnp.max(logits, axis=1, keepdims=True)
    e = jnp.exp(logits - m)
    s = jnp.sum(e, axis=1, keepdims=True)
    o_ref[0] = (e / s).astype(o_ref.dtype)


# ----------------------------------------------------------------------------
# One-time weight re-layout (outside the traced forward)
# ----------------------------------------------------------------------------
def _conv_to_toeplitz(w, w_in, w_out):
    """Torch conv weight (O, C, K, K) -> (K, C*w_in, O*w_out) banded slabs:
       out[di, c*w_in + w, o*w_out + j] = w[o, c, di, w - j] if 0 <= w-j < K else 0
    so that conv[i, (o, j)] = sum_di x_rows[i + di, (c, w)] @ out[di]."""
    O, C, Kh, Kw = w.shape
    wi = jnp.arange(w_in)[:, None]
    jo = jnp.arange(w_out)[None, :]
    d = wi - jo                                    # (w_in, w_out)
    valid = (d >= 0) & (d < Kw)
    dc = jnp.clip(d, 0, Kw - 1)
    band = w[:, :, :, dc]                          # (O, C, K, w_in, w_out)
    band = jnp.where(valid[None, None, None], band, 0.0)
    band = jnp.transpose(band, (2, 1, 3, 0, 4))    # (K, C, w_in, O, w_out)
    return band.reshape(Kh, C * w_in, O * w_out).astype(jnp.float32)


def _pool_w_select(o_ch, w_out):
    """0/1 matrix (o_ch*w_out - 1, o_ch*(w_out//2)) picking the even-j columns
    of a pairwise-max'd (o, j)-ordered conv output (stride-2 width pooling)."""
    cols = o_ch * (w_out // 2)
    m = jnp.arange(cols)
    src = (m // (w_out // 2)) * w_out + 2 * (m % (w_out // 2))
    r = jnp.arange(o_ch * w_out - 1)
    return (r[:, None] == src[None, :]).astype(jnp.float32)


def _pool_h_select(h_out):
    """0/1 matrix (h_out//2, h_out - 1) picking even rows of a pairwise-max'd slab."""
    p = jnp.arange(h_out // 2)[:, None]
    r = jnp.arange(h_out - 1)[None, :]
    return (r == 2 * p).astype(jnp.float32)


def prepare_params(params):
    prep = {
        "wt1": _conv_to_toeplitz(params["conv1_w"], IN_W, C1_WO),      # (5,192,168)
        "b1": jnp.repeat(params["conv1_b"], C1_WO).reshape(1, -1),     # (1,168)
        "s1w": _pool_w_select(C1_O, C1_WO),                            # (167,84)
        "s1h": _pool_h_select(C1_HO),                                  # (14,27)
        "wt2": _conv_to_toeplitz(params["conv2_w"], P1_W, C2_WO),      # (5,84,160)
        "b2": jnp.repeat(params["conv2_b"], C2_WO).reshape(1, -1),     # (1,160)
        "s2w": _pool_w_select(C2_O, C2_WO),                            # (159,80)
        "s2h": _pool_h_select(C2_HO),                                  # (5,9)
        # fc1: fold torch's (C,H,W)-flatten order into the weight and split the
        # contraction over the 5 pooled rows (no in-kernel flatten/reshape).
        "wfc1": jnp.transpose(
            params["fc1_w"].reshape(FC1_N, C2_O, P2_H, P2_W),
            (2, 1, 3, 0)).reshape(P2_H, C2_O * P2_W, FC1_N),           # (5,80,128)
        "bfc1": params["fc1_b"].reshape(1, -1),
        "wfc2": params["fc2_w"].T,                                     # (128,64)
        "bfc2": params["fc2_b"].reshape(1, -1),
        "wfc3": params["fc3_w"].T,                                     # (64,8)
        "bfc3": params["fc3_b"].reshape(1, -1),
    }
    return {k: v.astype(jnp.float32) for k, v in prep.items()}


_PREP_ORDER = ("wt1", "b1", "s1w", "s1h", "wt2", "b2", "s2w", "s2h",
               "wfc1", "bfc1", "wfc2", "bfc2", "wfc3", "bfc3")


def _full_spec(shape):
    nd = len(shape)
    return pl.BlockSpec(shape, lambda b, nd=nd: (0,) * nd)


# ----------------------------------------------------------------------------
# Forward
# ----------------------------------------------------------------------------
def lenet_forward(prep, x_nchw):
    B = x_nchw.shape[0]
    # NCHW -> (B, H, C*W): each row i holds all (c, w) pairs, c-major, matching
    # the Toeplitz weight row ordering (layout plumbing stays in XLA, runs once).
    x_rows = jnp.transpose(x_nchw.astype(jnp.float32), (0, 2, 1, 3)).reshape(
        B, IN_H, IN_C * IN_W)

    weights = [prep[k] for k in _PREP_ORDER]
    in_specs = [pl.BlockSpec((1, IN_H, IN_C * IN_W), lambda b: (b, 0, 0))]
    in_specs += [_full_spec(w.shape) for w in weights]

    out = pl.pallas_call(
        _lenet_kernel,
        out_shape=jax.ShapeDtypeStruct((B, 1, CLS), jnp.float32),
        grid=(B,),
        in_specs=in_specs,
        out_specs=pl.BlockSpec((1, 1, CLS), lambda b: (b, 0, 0)),
        compiler_params=pltpu.CompilerParams(
            dimension_semantics=("parallel",),
            vmem_limit_bytes=32 * 1024 * 1024,
        ),
    )(x_rows, *weights)
    return out.reshape(B, CLS)


# ----------------------------------------------------------------------------
# Synthetic params + pure-JAX reference (for self-check)
# ----------------------------------------------------------------------------
def init_params(key, input_channel=6, cls_num=8):
    ks = jax.random.split(key, 10)

    def unif(k, shape, fan_in):
        bound = 1.0 / jnp.sqrt(jnp.float32(fan_in))
        return jax.random.uniform(k, shape, jnp.float32, -bound, bound)

    return {
        "conv1_w": unif(ks[0], (6, input_channel, 5, 5), input_channel * 25),
        "conv1_b": unif(ks[1], (6,), input_channel * 25),
        "conv2_w": unif(ks[2], (16, 6, 5, 5), 6 * 25),
        "conv2_b": unif(ks[3], (16,), 6 * 25),
        "fc1_w": unif(ks[4], (128, 16 * 5 * 5), 16 * 5 * 5),  # torch (out, in)
        "fc1_b": unif(ks[5], (128,), 16 * 5 * 5),
        "fc2_w": unif(ks[6], (64, 128), 128),
        "fc2_b": unif(ks[7], (64,), 128),
        "fc3_w": unif(ks[8], (cls_num, 64), 64),
        "fc3_b": unif(ks[9], (cls_num,), 64),
    }


def lenet_reference(params, x_nchw):
    hp = lax.Precision.HIGHEST
    dn = ("NCHW", "OIHW", "NCHW")
    x = x_nchw.astype(jnp.float32)

    def conv(v, w, b):
        y = lax.conv_general_dilated(v, w, (1, 1), "VALID",
                                     dimension_numbers=dn, precision=hp)
        return jax.nn.relu(y + b[None, :, None, None])

    def pool(v):
        B, C, H, W = v.shape
        return v.reshape(B, C, H // 2, 2, W // 2, 2).max(axis=(3, 5))

    y = pool(conv(x, params["conv1_w"], params["conv1_b"]))
    y = pool(conv(y, params["conv2_w"], params["conv2_b"]))
    y = y.reshape(y.shape[0], -1)                       # torch flatten order
    y = jax.nn.relu(jnp.dot(y, params["fc1_w"].T, precision=hp) + params["fc1_b"])
    y = jax.nn.relu(jnp.dot(y, params["fc2_w"].T, precision=hp) + params["fc2_b"])
    y = jnp.dot(y, params["fc3_w"].T, precision=hp) + params["fc3_b"]
    return jax.nn.softmax(y, axis=1)


if __name__ == "__main__":
    key = jax.random.PRNGKey(0)
    k_param, k_input = jax.random.split(key)

    params = init_params(k_param, input_channel=IN_C, cls_num=CLS)
    x = jax.random.normal(k_input, (2, IN_C, IN_H, IN_W), dtype=jnp.float32)

    prep = prepare_params(params)        # one-time weight re-layout, outside jit
    fwd = jax.jit(lenet_forward)

    out = jax.block_until_ready(fwd(prep, x))

    assert out.shape == (2, CLS), out.shape
    assert bool(jnp.all(jnp.isfinite(out)))
    assert bool(jnp.allclose(jnp.sum(out, axis=1), 1.0, atol=1e-5))

    # Semantics check against a plain-JAX LeNet (tolerance loose enough to absorb
    # matmul-precision differences, tight enough to catch any layout bug).
    ref = jax.jit(lenet_reference)(params, x)
    assert bool(jnp.allclose(out, ref, atol=2e-2, rtol=0.0)), float(
        jnp.max(jnp.abs(out - ref)))

    print("KERNEL_OK")
</pallas_src>

<mosaic_0001>
module attributes {stable_mosaic.version = 11 : i64} {
  func.func @_lenet_kernel(%arg0: i32, %arg1: memref<1x32x192xf32, #tpu.memory_space<vmem>>, %arg2: memref<5x192x168xf32, #tpu.memory_space<vmem>>, %arg3: memref<1x168xf32, #tpu.memory_space<vmem>>, %arg4: memref<167x84xf32, #tpu.memory_space<vmem>>, %arg5: memref<14x27xf32, #tpu.memory_space<vmem>>, %arg6: memref<5x84x160xf32, #tpu.memory_space<vmem>>, %arg7: memref<1x160xf32, #tpu.memory_space<vmem>>, %arg8: memref<159x80xf32, #tpu.memory_space<vmem>>, %arg9: memref<5x9xf32, #tpu.memory_space<vmem>>, %arg10: memref<5x80x128xf32, #tpu.memory_space<vmem>>, %arg11: memref<1x128xf32, #tpu.memory_space<vmem>>, %arg12: memref<128x64xf32, #tpu.memory_space<vmem>>, %arg13: memref<1x64xf32, #tpu.memory_space<vmem>>, %arg14: memref<64x8xf32, #tpu.memory_space<vmem>>, %arg15: memref<1x8xf32, #tpu.memory_space<vmem>>, %arg16: memref<1x1x8xf32, #tpu.memory_space<vmem>>) attributes {dimension_semantics = [#tpu.dimension_semantics<parallel>], iteration_bounds = array<i64: 2>, scalar_prefetch = 0 : i64, scratch_operands = 0 : i64, tpu.core_type = #tpu.core_type<tc>, window_params = [{transform_indices = @transform_0, window_bounds = array<i64: 1, 32, 192>}, {pipeline_mode = #tpu.pipeline_mode<synchronous>, transform_indices = @transform_1, window_bounds = array<i64: 5, 192, 168>}, {pipeline_mode = #tpu.pipeline_mode<synchronous>, transform_indices = @transform_2, window_bounds = array<i64: 1, 168>}, {pipeline_mode = #tpu.pipeline_mode<synchronous>, transform_indices = @transform_3, window_bounds = array<i64: 167, 84>}, {pipeline_mode = #tpu.pipeline_mode<synchronous>, transform_indices = @transform_4, window_bounds = array<i64: 14, 27>}, {pipeline_mode = #tpu.pipeline_mode<synchronous>, transform_indices = @transform_5, window_bounds = array<i64: 5, 84, 160>}, {pipeline_mode = #tpu.pipeline_mode<synchronous>, transform_indices = @transform_6, window_bounds = array<i64: 1, 160>}, {pipeline_mode = #tpu.pipeline_mode<synchronous>, transform_indices = @transform_7, window_bounds = array<i64: 159, 80>}, {pipeline_mode = #tpu.pipeline_mode<synchronous>, transform_indices = @transform_8, window_bounds = array<i64: 5, 9>}, {pipeline_mode = #tpu.pipeline_mode<synchronous>, transform_indices = @transform_9, window_bounds = array<i64: 5, 80, 128>}, {pipeline_mode = #tpu.pipeline_mode<synchronous>, transform_indices = @transform_10, window_bounds = array<i64: 1, 128>}, {pipeline_mode = #tpu.pipeline_mode<synchronous>, transform_indices = @transform_11, window_bounds = array<i64: 128, 64>}, {pipeline_mode = #tpu.pipeline_mode<synchronous>, transform_indices = @transform_12, window_bounds = array<i64: 1, 64>}, {pipeline_mode = #tpu.pipeline_mode<synchronous>, transform_indices = @transform_13, window_bounds = array<i64: 64, 8>}, {pipeline_mode = #tpu.pipeline_mode<synchronous>, transform_indices = @transform_14, window_bounds = array<i64: 1, 8>}, {transform_indices = @transform_15, window_bounds = array<i64: 1, 1, 8>}]} {
    %c0 = arith.constant 0 : index
    %c0_0 = arith.constant 0 : index
    %c0_1 = arith.constant 0 : index
    %0 = vector.load %arg1[%c0, %c0_0, %c0_1] : memref<1x32x192xf32, #tpu.memory_space<vmem>>, vector<1x32x192xf32>
    %1 = vector.shape_cast %0 : vector<1x32x192xf32> to vector<32x192xf32>
    %2 = vector.extract_strided_slice %1 {offsets = [0, 0], sizes = [28, 192], strides = [1, 1]} : vector<32x192xf32> to vector<28x192xf32>
    %c0_2 = arith.constant 0 : index
    %c0_3 = arith.constant 0 : index
    %c0_4 = arith.constant 0 : index
    %3 = vector.load %arg2[%c0_2, %c0_3, %c0_4] : memref<5x192x168xf32, #tpu.memory_space<vmem>>, vector<1x192x168xf32>
    %4 = vector.shape_cast %3 : vector<1x192x168xf32> to vector<192x168xf32>
    %cst = arith.constant dense<0.000000e+00> : vector<28x168xf32>
    %5 = tpu.matmul %2, %4, %cst {dimension_numbers = #tpu.dot_dimension_numbers<[1], [0], [0], [1], [0, 0, 1, 1], [], []>} : vector<28x192xf32>, vector<192x168xf32>, vector<28x168xf32> -> vector<28x168xf32>
    %6 = vector.extract_strided_slice %1 {offsets = [1, 0], sizes = [28, 192], strides = [1, 1]} : vector<32x192xf32> to vector<28x192xf32>
    %c1 = arith.constant 1 : index
    %c0_5 = arith.constant 0 : index
    %c0_6 = arith.constant 0 : index
    %7 = vector.load %arg2[%c1, %c0_5, %c0_6] : memref<5x192x168xf32, #tpu.memory_space<vmem>>, vector<1x192x168xf32>
    %8 = vector.shape_cast %7 : vector<1x192x168xf32> to vector<192x168xf32>
    %cst_7 = arith.constant dense<0.000000e+00> : vector<28x168xf32>
    %9 = tpu.matmul %6, %8, %cst_7 {dimension_numbers = #tpu.dot_dimension_numbers<[1], [0], [0], [1], [0, 0, 1, 1], [], []>} : vector<28x192xf32>, vector<192x168xf32>, vector<28x168xf32> -> vector<28x168xf32>
    %10 = arith.addf %5, %9 : vector<28x168xf32>
    %11 = vector.extract_strided_slice %1 {offsets = [2, 0], sizes = [28, 192], strides = [1, 1]} : vector<32x192xf32> to vector<28x192xf32>
    %c2 = arith.constant 2 : index
    %c0_8 = arith.constant 0 : index
    %c0_9 = arith.constant 0 : index
    %12 = vector.load %arg2[%c2, %c0_8, %c0_9] : memref<5x192x168xf32, #tpu.memory_space<vmem>>, vector<1x192x168xf32>
    %13 = vector.shape_cast %12 : vector<1x192x168xf32> to vector<192x168xf32>
    %cst_10 = arith.constant dense<0.000000e+00> : vector<28x168xf32>
    %14 = tpu.matmul %11, %13, %cst_10 {dimension_numbers = #tpu.dot_dimension_numbers<[1], [0], [0], [1], [0, 0, 1, 1], [], []>} : vector<28x192xf32>, vector<192x168xf32>, vector<28x168xf32> -> vector<28x168xf32>
    %15 = arith.addf %10, %14 : vector<28x168xf32>
    %16 = vector.extract_strided_slice %1 {offsets = [3, 0], sizes = [28, 192], strides = [1, 1]} : vector<32x192xf32> to vector<28x192xf32>
    %c3 = arith.constant 3 : index
    %c0_11 = arith.constant 0 : index
    %c0_12 = arith.constant 0 : index
    %17 = vector.load %arg2[%c3, %c0_11, %c0_12] : memref<5x192x168xf32, #tpu.memory_space<vmem>>, vector<1x192x168xf32>
    %18 = vector.shape_cast %17 : vector<1x192x168xf32> to vector<192x168xf32>
    %cst_13 = arith.constant dense<0.000000e+00> : vector<28x168xf32>
    %19 = tpu.matmul %16, %18, %cst_13 {dimension_numbers = #tpu.dot_dimension_numbers<[1], [0], [0], [1], [0, 0, 1, 1], [], []>} : vector<28x192xf32>, vector<192x168xf32>, vector<28x168xf32> -> vector<28x168xf32>
    %20 = arith.addf %15, %19 : vector<28x168xf32>
    %21 = vector.extract_strided_slice %1 {offsets = [4, 0], sizes = [28, 192], strides = [1, 1]} : vector<32x192xf32> to vector<28x192xf32>
    %c4 = arith.constant 4 : index
    %c0_14 = arith.constant 0 : index
    %c0_15 = arith.constant 0 : index
    %22 = vector.load %arg2[%c4, %c0_14, %c0_15] : memref<5x192x168xf32, #tpu.memory_space<vmem>>, vector<1x192x168xf32>
    %23 = vector.shape_cast %22 : vector<1x192x168xf32> to vector<192x168xf32>
    %cst_16 = arith.constant dense<0.000000e+00> : vector<28x168xf32>
    %24 = tpu.matmul %21, %23, %cst_16 {dimension_numbers = #tpu.dot_dimension_numbers<[1], [0], [0], [1], [0, 0, 1, 1], [], []>} : vector<28x192xf32>, vector<192x168xf32>, vector<28x168xf32> -> vector<28x168xf32>
    %25 = arith.addf %20, %24 : vector<28x168xf32>
    %c0_17 = arith.constant 0 : index
    %c0_18 = arith.constant 0 : index
    %26 = vector.load %arg3[%c0_17, %c0_18] : memref<1x168xf32, #tpu.memory_space<vmem>>, vector<1x168xf32>
    %27 = vector.broadcast %26 : vector<1x168xf32> to vector<28x168xf32>
    %28 = arith.addf %25, %27 : vector<28x168xf32>
    %cst_19 = arith.constant 0.000000e+00 : f32
    %29 = vector.broadcast %cst_19 : f32 to vector<28x168xf32>
    %30 = arith.maximumf %28, %29 : vector<28x168xf32>
    %31 = vector.extract_strided_slice %30 {offsets = [0, 0], sizes = [28, 167], strides = [1, 1]} : vector<28x168xf32> to vector<28x167xf32>
    %32 = vector.extract_strided_slice %30 {offsets = [0, 1], sizes = [28, 167], strides = [1, 1]} : vector<28x168xf32> to vector<28x167xf32>
    %33 = arith.maximumf %31, %32 : vector<28x167xf32>
    %c0_20 = arith.constant 0 : index
    %c0_21 = arith.constant 0 : index
    %34 = vector.load %arg4[%c0_20, %c0_21] : memref<167x84xf32, #tpu.memory_space<vmem>>, vector<167x84xf32>
    %cst_22 = arith.constant dense<0.000000e+00> : vector<28x84xf32>
    %35 = tpu.matmul %33, %34, %cst_22 {dimension_numbers = #tpu.dot_dimension_numbers<[1], [0], [0], [1], [0, 0, 1, 1], [], []>} : vector<28x167xf32>, vector<167x84xf32>, vector<28x84xf32> -> vector<28x84xf32>
    %36 = vector.extract_strided_slice %35 {offsets = [0, 0], sizes = [27, 84], strides = [1, 1]} : vector<28x84xf32> to vector<27x84xf32>
    %37 = vector.extract_strided_slice %35 {offsets = [1, 0], sizes = [27, 84], strides = [1, 1]} : vector<28x84xf32> to vector<27x84xf32>
    %38 = arith.maximumf %36, %37 : vector<27x84xf32>
    %c0_23 = arith.constant 0 : index
    %c0_24 = arith.constant 0 : index
    %39 = vector.load %arg5[%c0_23, %c0_24] : memref<14x27xf32, #tpu.memory_space<vmem>>, vector<14x27xf32>
    %cst_25 = arith.constant dense<0.000000e+00> : vector<14x84xf32>
    %40 = tpu.matmul %39, %38, %cst_25 {dimension_numbers = #tpu.dot_dimension_numbers<[1], [0], [0], [1], [0, 0, 1, 1], [], []>} : vector<14x27xf32>, vector<27x84xf32>, vector<14x84xf32> -> vector<14x84xf32>
    %41 = vector.extract_strided_slice %40 {offsets = [0, 0], sizes = [10, 84], strides = [1, 1]} : vector<14x84xf32> to vector<10x84xf32>
    %c0_26 = arith.constant 0 : index
    %c0_27 = arith.constant 0 : index
    %c0_28 = arith.constant 0 : index
    %42 = vector.load %arg6[%c0_26, %c0_27, %c0_28] : memref<5x84x160xf32, #tpu.memory_space<vmem>>, vector<1x84x160xf32>
    %43 = vector.shape_cast %42 : vector<1x84x160xf32> to vector<84x160xf32>
    %cst_29 = arith.constant dense<0.000000e+00> : vector<10x160xf32>
    %44 = tpu.matmul %41, %43, %cst_29 {dimension_numbers = #tpu.dot_dimension_numbers<[1], [0], [0], [1], [0, 0, 1, 1], [], []>} : vector<10x84xf32>, vector<84x160xf32>, vector<10x160xf32> -> vector<10x160xf32>
    %45 = vector.extract_strided_slice %40 {offsets = [1, 0], sizes = [10, 84], strides = [1, 1]} : vector<14x84xf32> to vector<10x84xf32>
    %c1_30 = arith.constant 1 : index
    %c0_31 = arith.constant 0 : index
    %c0_32 = arith.constant 0 : index
    %46 = vector.load %arg6[%c1_30, %c0_31, %c0_32] : memref<5x84x160xf32, #tpu.memory_space<vmem>>, vector<1x84x160xf32>
    %47 = vector.shape_cast %46 : vector<1x84x160xf32> to vector<84x160xf32>
    %cst_33 = arith.constant dense<0.000000e+00> : vector<10x160xf32>
    %48 = tpu.matmul %45, %47, %cst_33 {dimension_numbers = #tpu.dot_dimension_numbers<[1], [0], [0], [1], [0, 0, 1, 1], [], []>} : vector<10x84xf32>, vector<84x160xf32>, vector<10x160xf32> -> vector<10x160xf32>
    %49 = arith.addf %44, %48 : vector<10x160xf32>
    %50 = vector.extract_strided_slice %40 {offsets = [2, 0], sizes = [10, 84], strides = [1, 1]} : vector<14x84xf32> to vector<10x84xf32>
    %c2_34 = arith.constant 2 : index
    %c0_35 = arith.constant 0 : index
    %c0_36 = arith.constant 0 : index
    %51 = vector.load %arg6[%c2_34, %c0_35, %c0_36] : memref<5x84x160xf32, #tpu.memory_space<vmem>>, vector<1x84x160xf32>
    %52 = vector.shape_cast %51 : vector<1x84x160xf32> to vector<84x160xf32>
    %cst_37 = arith.constant dense<0.000000e+00> : vector<10x160xf32>
    %53 = tpu.matmul %50, %52, %cst_37 {dimension_numbers = #tpu.dot_dimension_numbers<[1], [0], [0], [1], [0, 0, 1, 1], [], []>} : vector<10x84xf32>, vector<84x160xf32>, vector<10x160xf32> -> vector<10x160xf32>
    %54 = arith.addf %49, %53 : vector<10x160xf32>
    %55 = vector.extract_strided_slice %40 {offsets = [3, 0], sizes = [10, 84], strides = [1, 1]} : vector<14x84xf32> to vector<10x84xf32>
    %c3_38 = arith.constant 3 : index
    %c0_39 = arith.constant 0 : index
    %c0_40 = arith.constant 0 : index
    %56 = vector.load %arg6[%c3_38, %c0_39, %c0_40] : memref<5x84x160xf32, #tpu.memory_space<vmem>>, vector<1x84x160xf32>
    %57 = vector.shape_cast %56 : vector<1x84x160xf32> to vector<84x160xf32>
    %cst_41 = arith.constant dense<0.000000e+00> : vector<10x160xf32>
    %58 = tpu.matmul %55, %57, %cst_41 {dimension_numbers = #tpu.dot_dimension_numbers<[1], [0], [0], [1], [0, 0, 1, 1], [], []>} : vector<10x84xf32>, vector<84x160xf32>, vector<10x160xf32> -> vector<10x160xf32>
    %59 = arith.addf %54, %58 : vector<10x160xf32>
    %60 = vector.extract_strided_slice %40 {offsets = [4, 0], sizes = [10, 84], strides = [1, 1]} : vector<14x84xf32> to vector<10x84xf32>
    %c4_42 = arith.constant 4 : index
    %c0_43 = arith.constant 0 : index
    %c0_44 = arith.constant 0 : index
    %61 = vector.load %arg6[%c4_42, %c0_43, %c0_44] : memref<5x84x160xf32, #tpu.memory_space<vmem>>, vector<1x84x160xf32>
    %62 = vector.shape_cast %61 : vector<1x84x160xf32> to vector<84x160xf32>
    %cst_45 = arith.constant dense<0.000000e+00> : vector<10x160xf32>
    %63 = tpu.matmul %60, %62, %cst_45 {dimension_numbers = #tpu.dot_dimension_numbers<[1], [0], [0], [1], [0, 0, 1, 1], [], []>} : vector<10x84xf32>, vector<84x160xf32>, vector<10x160xf32> -> vector<10x160xf32>
    %64 = arith.addf %59, %63 : vector<10x160xf32>
    %c0_46 = arith.constant 0 : index
    %c0_47 = arith.constant 0 : index
    %65 = vector.load %arg7[%c0_46, %c0_47] : memref<1x160xf32, #tpu.memory_space<vmem>>, vector<1x160xf32>
    %66 = vector.broadcast %65 : vector<1x160xf32> to vector<10x160xf32>
    %67 = arith.addf %64, %66 : vector<10x160xf32>
    %cst_48 = arith.constant 0.000000e+00 : f32
    %68 = vector.broadcast %cst_48 : f32 to vector<10x160xf32>
    %69 = arith.maximumf %67, %68 : vector<10x160xf32>
    %70 = vector.extract_strided_slice %69 {offsets = [0, 0], sizes = [10, 159], strides = [1, 1]} : vector<10x160xf32> to vector<10x159xf32>
    %71 = vector.extract_strided_slice %69 {offsets = [0, 1], sizes = [10, 159], strides = [1, 1]} : vector<10x160xf32> to vector<10x159xf32>
    %72 = arith.maximumf %70, %71 : vector<10x159xf32>
    %c0_49 = arith.constant 0 : index
    %c0_50 = arith.constant 0 : index
    %73 = vector.load %arg8[%c0_49, %c0_50] : memref<159x80xf32, #tpu.memory_space<vmem>>, vector<159x80xf32>
    %cst_51 = arith.constant dense<0.000000e+00> : vector<10x80xf32>
    %74 = tpu.matmul %72, %73, %cst_51 {dimension_numbers = #tpu.dot_dimension_numbers<[1], [0], [0], [1], [0, 0, 1, 1], [], []>} : vector<10x159xf32>, vector<159x80xf32>, vector<10x80xf32> -> vector<10x80xf32>
    %75 = vector.extract_strided_slice %74 {offsets = [0, 0], sizes = [9, 80], strides = [1, 1]} : vector<10x80xf32> to vector<9x80xf32>
    %76 = vector.extract_strided_slice %74 {offsets = [1, 0], sizes = [9, 80], strides = [1, 1]} : vector<10x80xf32> to vector<9x80xf32>
    %77 = arith.maximumf %75, %76 : vector<9x80xf32>
    %c0_52 = arith.constant 0 : index
    %c0_53 = arith.constant 0 : index
    %78 = vector.load %arg9[%c0_52, %c0_53] : memref<5x9xf32, #tpu.memory_space<vmem>>, vector<5x9xf32>
    %cst_54 = arith.constant dense<0.000000e+00> : vector<5x80xf32>
    %79 = tpu.matmul %78, %77, %cst_54 {dimension_numbers = #tpu.dot_dimension_numbers<[1], [0], [0], [1], [0, 0, 1, 1], [], []>} : vector<5x9xf32>, vector<9x80xf32>, vector<5x80xf32> -> vector<5x80xf32>
    %80 = vector.extract_strided_slice %79 {offsets = [0, 0], sizes = [1, 80], strides = [1, 1]} : vector<5x80xf32> to vector<1x80xf32>
    %c0_55 = arith.constant 0 : index
    %c0_56 = arith.constant 0 : index
    %c0_57 = arith.constant 0 : index
    %81 = vector.load %arg10[%c0_55, %c0_56, %c0_57] : memref<5x80x128xf32, #tpu.memory_space<vmem>>, vector<1x80x128xf32>
    %82 = vector.shape_cast %81 : vector<1x80x128xf32> to vector<80x128xf32>
    %cst_58 = arith.constant dense<0.000000e+00> : vector<1x128xf32>
    %83 = tpu.matmul %80, %82, %cst_58 {dimension_numbers = #tpu.dot_dimension_numbers<[1], [0], [0], [1], [0, 0, 1, 1], [], []>} : vector<1x80xf32>, vector<80x128xf32>, vector<1x128xf32> -> vector<1x128xf32>
    %84 = vector.extract_strided_slice %79 {offsets = [1, 0], sizes = [1, 80], strides = [1, 1]} : vector<5x80xf32> to vector<1x80xf32>
    %c1_59 = arith.constant 1 : index
    %c0_60 = arith.constant 0 : index
    %c0_61 = arith.constant 0 : index
    %85 = vector.load %arg10[%c1_59, %c0_60, %c0_61] : memref<5x80x128xf32, #tpu.memory_space<vmem>>, vector<1x80x128xf32>
    %86 = vector.shape_cast %85 : vector<1x80x128xf32> to vector<80x128xf32>
    %cst_62 = arith.constant dense<0.000000e+00> : vector<1x128xf32>
    %87 = tpu.matmul %84, %86, %cst_62 {dimension_numbers = #tpu.dot_dimension_numbers<[1], [0], [0], [1], [0, 0, 1, 1], [], []>} : vector<1x80xf32>, vector<80x128xf32>, vector<1x128xf32> -> vector<1x128xf32>
    %88 = arith.addf %83, %87 : vector<1x128xf32>
    %89 = vector.extract_strided_slice %79 {offsets = [2, 0], sizes = [1, 80], strides = [1, 1]} : vector<5x80xf32> to vector<1x80xf32>
    %c2_63 = arith.constant 2 : index
    %c0_64 = arith.constant 0 : index
    %c0_65 = arith.constant 0 : index
    %90 = vector.load %arg10[%c2_63, %c0_64, %c0_65] : memref<5x80x128xf32, #tpu.memory_space<vmem>>, vector<1x80x128xf32>
    %91 = vector.shape_cast %90 : vector<1x80x128xf32> to vector<80x128xf32>
    %cst_66 = arith.constant dense<0.000000e+00> : vector<1x128xf32>
    %92 = tpu.matmul %89, %91, %cst_66 {dimension_numbers = #tpu.dot_dimension_numbers<[1], [0], [0], [1], [0, 0, 1, 1], [], []>} : vector<1x80xf32>, vector<80x128xf32>, vector<1x128xf32> -> vector<1x128xf32>
    %93 = arith.addf %88, %92 : vector<1x128xf32>
    %94 = vector.extract_strided_slice %79 {offsets = [3, 0], sizes = [1, 80], strides = [1, 1]} : vector<5x80xf32> to vector<1x80xf32>
    %c3_67 = arith.constant 3 : index
    %c0_68 = arith.constant 0 : index
    %c0_69 = arith.constant 0 : index
    %95 = vector.load %arg10[%c3_67, %c0_68, %c0_69] : memref<5x80x128xf32, #tpu.memory_space<vmem>>, vector<1x80x128xf32>
    %96 = vector.shape_cast %95 : vector<1x80x128xf32> to vector<80x128xf32>
    %cst_70 = arith.constant dense<0.000000e+00> : vector<1x128xf32>
    %97 = tpu.matmul %94, %96, %cst_70 {dimension_numbers = #tpu.dot_dimension_numbers<[1], [0], [0], [1], [0, 0, 1, 1], [], []>} : vector<1x80xf32>, vector<80x128xf32>, vector<1x128xf32> -> vector<1x128xf32>
    %98 = arith.addf %93, %97 : vector<1x128xf32>
    %99 = vector.extract_strided_slice %79 {offsets = [4, 0], sizes = [1, 80], strides = [1, 1]} : vector<5x80xf32> to vector<1x80xf32>
    %c4_71 = arith.constant 4 : index
    %c0_72 = arith.constant 0 : index
    %c0_73 = arith.constant 0 : index
    %100 = vector.load %arg10[%c4_71, %c0_72, %c0_73] : memref<5x80x128xf32, #tpu.memory_space<vmem>>, vector<1x80x128xf32>
    %101 = vector.shape_cast %100 : vector<1x80x128xf32> to vector<80x128xf32>
    %cst_74 = arith.constant dense<0.000000e+00> : vector<1x128xf32>
    %102 = tpu.matmul %99, %101, %cst_74 {dimension_numbers = #tpu.dot_dimension_numbers<[1], [0], [0], [1], [0, 0, 1, 1], [], []>} : vector<1x80xf32>, vector<80x128xf32>, vector<1x128xf32> -> vector<1x128xf32>
    %103 = arith.addf %98, %102 : vector<1x128xf32>
    %c0_75 = arith.constant 0 : index
    %c0_76 = arith.constant 0 : index
    %104 = vector.load %arg11[%c0_75, %c0_76] : memref<1x128xf32, #tpu.memory_space<vmem>>, vector<1x128xf32>
    %105 = arith.addf %103, %104 : vector<1x128xf32>
    %cst_77 = arith.constant 0.000000e+00 : f32
    %106 = vector.broadcast %cst_77 : f32 to vector<1x128xf32>
    %107 = arith.maximumf %105, %106 : vector<1x128xf32>
    %c0_78 = arith.constant 0 : index
    %c0_79 = arith.constant 0 : index
    %108 = vector.load %arg12[%c0_78, %c0_79] : memref<128x64xf32, #tpu.memory_space<vmem>>, vector<128x64xf32>
    %cst_80 = arith.constant dense<0.000000e+00> : vector<1x64xf32>
    %109 = tpu.matmul %107, %108, %cst_80 {dimension_numbers = #tpu.dot_dimension_numbers<[1], [0], [0], [1], [0, 0, 1, 1], [], []>} : vector<1x128xf32>, vector<128x64xf32>, vector<1x64xf32> -> vector<1x64xf32>
    %c0_81 = arith.constant 0 : index
    %c0_82 = arith.constant 0 : index
    %110 = vector.load %arg13[%c0_81, %c0_82] : memref<1x64xf32, #tpu.memory_space<vmem>>, vector<1x64xf32>
    %111 = arith.addf %109, %110 : vector<1x64xf32>
    %cst_83 = arith.constant 0.000000e+00 : f32
    %112 = vector.broadcast %cst_83 : f32 to vector<1x64xf32>
    %113 = arith.maximumf %111, %112 : vector<1x64xf32>
    %c0_84 = arith.constant 0 : index
    %c0_85 = arith.constant 0 : index
    %114 = vector.load %arg14[%c0_84, %c0_85] : memref<64x8xf32, #tpu.memory_space<vmem>>, vector<64x8xf32>
    %cst_86 = arith.constant dense<0.000000e+00> : vector<1x8xf32>
    %115 = tpu.matmul %113, %114, %cst_86 {dimension_numbers = #tpu.dot_dimension_numbers<[1], [0], [0], [1], [0, 0, 1, 1], [], []>} : vector<1x64xf32>, vector<64x8xf32>, vector<1x8xf32> -> vector<1x8xf32>
    %c0_87 = arith.constant 0 : index
    %c0_88 = arith.constant 0 : index
    %116 = vector.load %arg15[%c0_87, %c0_88] : memref<1x8xf32, #tpu.memory_space<vmem>>, vector<1x8xf32>
    %117 = arith.addf %115, %116 : vector<1x8xf32>
    %cst_89 = arith.constant dense<0xFF800000> : vector<1xf32>
    %118 = vector.multi_reduction <maximumf>, %117, %cst_89 [1] : vector<1x8xf32> to vector<1xf32>
    %119 = vector.shape_cast %118 : vector<1xf32> to vector<1x1xf32>
    %120 = vector.broadcast %119 : vector<1x1xf32> to vector<1x8xf32>
    %121 = arith.subf %117, %120 : vector<1x8xf32>
    %122 = math.exp %121 : vector<1x8xf32>
    %cst_90 = arith.constant dense<0.000000e+00> : vector<1xf32>
    %123 = vector.multi_reduction <add>, %122, %cst_90 [1] : vector<1x8xf32> to vector<1xf32>
    %124 = vector.shape_cast %123 : vector<1xf32> to vector<1x1xf32>
    %125 = vector.broadcast %124 : vector<1x1xf32> to vector<1x8xf32>
    %126 = arith.divf %122, %125 : vector<1x8xf32>
    %c0_91 = arith.constant 0 : index
    %c0_92 = arith.constant 0 : index
    %c0_93 = arith.constant 0 : index
    %127 = vector.load %arg16[%c0_91, %c0_92, %c0_93] : memref<1x1x8xf32, #tpu.memory_space<vmem>>, vector<1x1x8xf32>
    %128 = vector.shape_cast %127 : vector<1x1x8xf32> to vector<1x8xf32>
    %129 = vector.shape_cast %126 : vector<1x8xf32> to vector<1x1x8xf32>
    tpu.vector_store %arg16[%c0_91, %c0_92, %c0_93], %129 {strides = array<i32>} : memref<1x1x8xf32, #tpu.memory_space<vmem>>, vector<1x1x8xf32>,
    return
  }
  func.func @transform_0(%arg0: i32) -> (i32, i32, i32) {
    %c0_i32 = arith.constant 0 : i32
    %c0_i32_0 = arith.constant 0 : i32
    %c0_i32_1 = arith.constant 0 : i32
    return %arg0, %c0_i32, %c0_i32_0 : i32, i32, i32
  }
  func.func @transform_1(%arg0: i32) -> (i32, i32, i32) {
    %c0_i32 = arith.constant 0 : i32
    %c0_i32_0 = arith.constant 0 : i32
    %c0_i32_1 = arith.constant 0 : i32
    %c0_i32_2 = arith.constant 0 : i32
    return %c0_i32, %c0_i32_0, %c0_i32_1 : i32, i32, i32
  }
  func.func @transform_2(%arg0: i32) -> (i32, i32) {
    %c0_i32 = arith.constant 0 : i32
    %c0_i32_0 = arith.constant 0 : i32
    %c0_i32_1 = arith.constant 0 : i32
    return %c0_i32, %c0_i32_0 : i32, i32
  }
  func.func @transform_3(%arg0: i32) -> (i32, i32) {
    %c0_i32 = arith.constant 0 : i32
    %c0_i32_0 = arith.constant 0 : i32
    %c0_i32_1 = arith.constant 0 : i32
    return %c0_i32, %c0_i32_0 : i32, i32
  }
  func.func @transform_4(%arg0: i32) -> (i32, i32) {
    %c0_i32 = arith.constant 0 : i32
    %c0_i32_0 = arith.constant 0 : i32
    %c0_i32_1 = arith.constant 0 : i32
    return %c0_i32, %c0_i32_0 : i32, i32
  }
  func.func @transform_5(%arg0: i32) -> (i32, i32, i32) {
    %c0_i32 = arith.constant 0 : i32
    %c0_i32_0 = arith.constant 0 : i32
    %c0_i32_1 = arith.constant 0 : i32
    %c0_i32_2 = arith.constant 0 : i32
    return %c0_i32, %c0_i32_0, %c0_i32_1 : i32, i32, i32
  }
  func.func @transform_6(%arg0: i32) -> (i32, i32) {
    %c0_i32 = arith.constant 0 : i32
    %c0_i32_0 = arith.constant 0 : i32
    %c0_i32_1 = arith.constant 0 : i32
    return %c0_i32, %c0_i32_0 : i32, i32
  }
  func.func @transform_7(%arg0: i32) -> (i32, i32) {
    %c0_i32 = arith.constant 0 : i32
    %c0_i32_0 = arith.constant 0 : i32
    %c0_i32_1 = arith.constant 0 : i32
    return %c0_i32, %c0_i32_0 : i32, i32
  }
  func.func @transform_8(%arg0: i32) -> (i32, i32) {
    %c0_i32 = arith.constant 0 : i32
    %c0_i32_0 = arith.constant 0 : i32
    %c0_i32_1 = arith.constant 0 : i32
    return %c0_i32, %c0_i32_0 : i32, i32
  }
  func.func @transform_9(%arg0: i32) -> (i32, i32, i32) {
    %c0_i32 = arith.constant 0 : i32
    %c0_i32_0 = arith.constant 0 : i32
    %c0_i32_1 = arith.constant 0 : i32
    %c0_i32_2 = arith.constant 0 : i32
    return %c0_i32, %c0_i32_0, %c0_i32_1 : i32, i32, i32
  }
  func.func @transform_10(%arg0: i32) -> (i32, i32) {
    %c0_i32 = arith.constant 0 : i32
    %c0_i32_0 = arith.constant 0 : i32
    %c0_i32_1 = arith.constant 0 : i32
    return %c0_i32, %c0_i32_0 : i32, i32
  }
  func.func @transform_11(%arg0: i32) -> (i32, i32) {
    %c0_i32 = arith.constant 0 : i32
    %c0_i32_0 = arith.constant 0 : i32
    %c0_i32_1 = arith.constant 0 : i32
    return %c0_i32, %c0_i32_0 : i32, i32
  }
  func.func @transform_12(%arg0: i32) -> (i32, i32) {
    %c0_i32 = arith.constant 0 : i32
    %c0_i32_0 = arith.constant 0 : i32
    %c0_i32_1 = arith.constant 0 : i32
    return %c0_i32, %c0_i32_0 : i32, i32
  }
  func.func @transform_13(%arg0: i32) -> (i32, i32) {
    %c0_i32 = arith.constant 0 : i32
    %c0_i32_0 = arith.constant 0 : i32
    %c0_i32_1 = arith.constant 0 : i32
    return %c0_i32, %c0_i32_0 : i32, i32
  }
  func.func @transform_14(%arg0: i32) -> (i32, i32) {
    %c0_i32 = arith.constant 0 : i32
    %c0_i32_0 = arith.constant 0 : i32
    %c0_i32_1 = arith.constant 0 : i32
    return %c0_i32, %c0_i32_0 : i32, i32
  }
  func.func @transform_15(%arg0: i32) -> (i32, i32, i32) {
    %c0_i32 = arith.constant 0 : i32
    %c0_i32_0 = arith.constant 0 : i32
    %c0_i32_1 = arith.constant 0 : i32
    return %arg0, %c0_i32, %c0_i32_0 : i32, i32, i32
  }
}

</mosaic_0001>

<bundles_post_ra>
// kernel: lenet_forward.1
= control target key start
LH: loop header
LB: loop body
LE: loop exit
PB: predicated region body
PF: predicated region fallthrough
CT: control target
= control target key end

     0   :  { %20 = vsyncpa [#allocation3], 0  ;;  %s6409_s0 = inlined_call_operand.vmem [shape: f32[2,32,192], index: 0, kind: input, shape index: {}]   ;;  %s6410_s1 = inlined_call_operand.vmem [shape: f32[5,192,168], index: 1, kind: input, shape index: {}]   ;;  %s6411_s2 = inlined_call_operand.vmem [shape: f32[1,168], index: 2, kind: input, shape index: {}]   ;;  %s6412_s3 = inlined_call_operand.vmem [shape: f32[167,84], index: 3, kind: input, shape index: {}]   ;;  %s6413_s4 = inlined_call_operand.vmem [shape: f32[14,27], index: 4, kind: input, shape index: {}]   ;;  %s6414_s5 = inlined_call_operand.vmem [shape: f32[5,84,160], index: 5, kind: input, shape index: {}]   ;;  %s6415_s6 = inlined_call_operand.vmem [shape: f32[1,160], index: 6, kind: input, shape index: {}]   ;;  %s6416_s7 = inlined_call_operand.vmem [shape: f32[159,80], index: 7, kind: input, shape index: {}]   ;;  %s6417_s8 = inlined_call_operand.vmem [shape: f32[5,9], index: 8, kind: input, shape index: {}]   ;;  %s6418_s9 = inlined_call_operand.vmem [shape: f32[5,80,128], index: 9, kind: input, shape index: {}]   ;;  %s6419_s10 = inlined_call_operand.vmem [shape: f32[1,128], index: 10, kind: input, shape index: {}]   ;;  %s6420_s11 = inlined_call_operand.vmem [shape: f32[128,64], index: 11, kind: input, shape index: {}]   ;;  %s6421_s12 = inlined_call_operand.vmem [shape: f32[1,64], index: 12, kind: input, shape index: {}]   ;;  %s6422_s13 = inlined_call_operand.vmem [shape: f32[64,8], index: 13, kind: input, shape index: {}]   ;;  %s6423_s14 = inlined_call_operand.vmem [shape: f32[1,8], index: 14, kind: input, shape index: {}]   ;;  %s6424_s15 = inlined_call_operand.hbm [shape: f32[2,1,8], index: 15, kind: output, shape index: {}]  }
   0x1   :  { %22 = vsyncpa [#allocation3 + $0x1], 0  ;;  %s4566_s18 = smov 0   ;;  %s4568_s19 = smov 0  }
   0x2   :  { %s4570_s20 = smov 0   ;;  %s4572_s21 = smov 0  }
   0x3 LB: > { %6431 = sst [smem:[#allocation5_spill]] %s4466_s18  ;;  %s4587_s22 = sadd.s32 4294967295, %s4478_s21   ;;  %s4478_s21 = sphi %s4572_s21, %s6442_s21   ;;  %s4474_s20 = sphi %s4570_s20, %s6444_s20   ;;  %s4470_s19 = sphi %s4568_s19, %s6446_s19   ;;  %s4466_s18 = sphi %s4566_s18, %s6445_s18  }
   0x4   : > { %6432 = sst [smem:[#allocation6_spill]] %s4474_s20  ;;  %s3128_s23 = sadd.s32 4294967294, %s4478_s21  }
   0x5   : > { %6433 = sst [smem:[#allocation7_spill]] %s4478_s21  ;;  %s4591_s24 = sadd.s32 1, %s4478_s21  }
   0x6   : > { %6434 = sst [smem:[#allocation8_spill]] %s4591_s24  ;;  %s355_s25 = sadd.s32 1, %s4474_s20 }
   0x7   : > { %s352_s26 = ssub.s32 %s4478_s21, %s4591_s24  ;;  %p365_p0 = scmp.ne.s32.totalorder %s4474_s20, %s4470_s19 }
   0x8   : > { %p353_p1 = scmp.eq.s32.totalorder %s352_s26, 0  ;;  %p366_p2 = scmp.eq.s32.totalorder %s4587_s22, 1 }
   0x9   : > { %p371_p3 = scmp.ne.s32.totalorder %s4470_s19, %s4466_s18  ;;  %p372_p4 = scmp.eq.s32.totalorder %s3128_s23, 1 }
   0xa   : > { %s4602_s27 = scalar_select %p353_p1, %s4474_s20, %s355_s25  }
   0xb   : > { %p4604_p5 = por %p366_p2, %p365_p0  ;;  %p4608_p6 = por %p372_p4, %p371_p3 }
   0xc   : > { %6435 = sst [smem:[#allocation9_spill]] %s4602_s27  ;;  %p3131_p7 = scmp.ge.s32.totalorder %s4478_s21, 1 }
   0xd   : > { %s6437_s29 = scalar_select %p4608_p6, 1, 0 }
   0xe   : > { %p440_p8 = scmp.lt.s32.totalorder %s4478_s21, 3 }
   0xf   : > { %6438 = sst [smem:[#allocation10_spill]] %s6437_s29 }
  0x10   : > { %p441_p9 = pnand %p3131_p7, %p440_p8 }
  0x11   : > { %v3135_v0 = vld [vmem:[%s6410_s1 + $0x188] sm:$0xff] (!%p441_p9)  ;;  %v3137_v1 = vld [vmem:[%s6410_s1 + $0x198] sm:$0xff] (!%p441_p9)  ;;  %v3134_v2 = vld [vmem:[%s6410_s1 + $0x180] sm:$0xff] (!%p441_p9)  ;;  %p487_p10 = scmp.lt.s32.totalorder (!%p441_p9), %s4587_s22, 1  ;;  %vm605_vm0 = vcmask (!%p441_p9), 1046528   ;;  %vm624_vm1 = vcmask (!%p441_p9), 523264  }
  0x12   : > { %444 = sbr.rel (%p441_p9) target bundleno = 2930 (0xb72), region = 80  ;;  %v3794_v3 = vpack.c.bf16 (!%p441_p9), %v3137_v1, %v3135_v0  ;;  %v3136_v4 = vld [vmem:[%s6410_s1 + $0x190] sm:$0xff] (!%p441_p9)  ;;  %v3139_v5 = vld [vmem:[%s6410_s1 + $0x1a8] sm:$0xff] (!%p441_p9)  ;;  %v3141_v6 = vld [vmem:[%s6410_s1 + $0x1b8] sm:$0xff] (!%p441_p9)  ;;  %vm868_vm2 = vcmask (!%p441_p9), 1045504   ;;  %vm1041_vm3 = vcmask (!%p441_p9), 1044480  }
  0x13   : > { %v3796_v7 = vpack.c.bf16 (!%p441_p9), %v3136_v4, %v3134_v2  ;;  %v3798_v8 = vpack.c.bf16 (!%p441_p9), %v3141_v6, %v3139_v5  ;;  %v3138_v9 = vld [vmem:[%s6410_s1 + $0x1a0] sm:$0xff] (!%p441_p9)  ;;  %v3140_v10 = vld [vmem:[%s6410_s1 + $0x1b0] sm:$0xff] (!%p441_p9)  ;;  %v3143_v11 = vld [vmem:[%s6410_s1 + $0x1c8] sm:$0xff] (!%p441_p9)  ;;  %vm1214_vm4 = vcmask (!%p441_p9), 1043456   ;;  %vm1390_vm5 = vcmask (!%p441_p9), 1039360   ;;  %s3513_s26 = sshll.u32 (!%p441_p9), %s4587_s22, 4 }
  0x14   : > { %3795 = vmatprep.subr.bf16.mxu0 (!%p441_p9), %v3794_v3  ;;  %v3145_v12 = vld [vmem:[%s6410_s1 + $0x1d8] sm:$0xff] (!%p441_p9)  ;;  %v3800_v13 = vpack.c.bf16 (!%p441_p9), %v3140_v10, %v3138_v9  ;;  %v3142_v15 = vld [vmem:[%s6410_s1 + $0x1c0] sm:$0xff] (!%p441_p9)  ;;  %v3144_v16 = vld [vmem:[%s6410_s1 + $0x1d0] sm:$0xff] (!%p441_p9)  ;;  %vm1432_vm6 = vcmask (!%p441_p9), 318464   ;;  %vm1554_vm7 = vcmask (!%p441_p9), 220160   ;;  %vm1561_vm8 = vcmask (!%p441_p9), 1042432   ;;  %s6366_s29 = scalar_lea.hbm (!%p441_p9), %s6424_s15, %s3513_s26 }
  0x15   : > { %3797 = vmatpush1.bf16.msra.mxu0 (!%p441_p9), %v3796_v7  ;;  %v3802_v14 = vpack.c.bf16 (!%p441_p9), %v3145_v12, %v3143_v11  ;;  %v3147_v17 = vld [vmem:[%s6410_s1 + $0x1e8] sm:$0xff] (!%p441_p9)  ;;  %v3149_v18 = vld [vmem:[%s6410_s1 + $0x1f8] sm:$0xff] (!%p441_p9)  ;;  %v3804_v19 = vpack.c.bf16 (!%p441_p9), %v3144_v16, %v3142_v15  ;;  %v3146_v21 = vld [vmem:[%s6410_s1 + $0x1e0] sm:$0xff] (!%p441_p9)  ;;  %vm4483_vm9 = vmmov (!%p441_p9), 1   ;;  %vm1690_vm11 = vcmask (!%p441_p9), 687104  }
  0x16   : > { %3799 = vmatprep.subr.bf16.mxu0 (!%p441_p9), %v3798_v8  ;;  %v3806_v20 = vpack.c.bf16 (!%p441_p9), %v3149_v18, %v3147_v17  ;;  %v3148_v22 = vld [vmem:[%s6410_s1 + $0x1f0] sm:$0xff] (!%p441_p9)  ;;  %v3151_v23 = vld [vmem:[%s6410_s1 + $0x208] sm:$0xff] (!%p441_p9)  ;;  %v3153_v24 = vld [vmem:[%s6410_s1 + $0x218] sm:$0xff] (!%p441_p9)  ;;  %vm2278_vm13 = vcmask (!%p441_p9), 252928   ;;  %vm4484_vm14 = vmmov (!%p441_p9), 0   ;;  %vm2377_vm15 = vcmask (!%p441_p9), 1040384  }
  0x17   : > { %v3808_v25 = vpack.c.bf16 (!%p441_p9), %v3148_v22, %v3146_v21  ;;  %v3810_v26 = vpack.c.bf16 (!%p441_p9), %v3153_v24, %v3151_v23  ;;  %v3150_v27 = vld [vmem:[%s6410_s1 + $0x200] sm:$0xff] (!%p441_p9)  ;;  %v3152_v28 = vld [vmem:[%s6410_s1 + $0x210] sm:$0xff] (!%p441_p9)  ;;  %v3155_v29 = vld [vmem:[%s6410_s1 + $0x228] sm:$0xff] (!%p441_p9) }
  0x18   : > { %v3157_v30 = vld [vmem:[%s6410_s1 + $0x238] sm:$0xff] (!%p441_p9)  ;;  %v3812_v31 = vpack.c.bf16 (!%p441_p9), %v3152_v28, %v3150_v27  ;;  %v3154_v35 = vld [vmem:[%s6410_s1 + $0x220] sm:$0xff] (!%p441_p9)  ;;  %v3156_v36 = vld [vmem:[%s6410_s1 + $0x230] sm:$0xff] (!%p441_p9) }
  0x19   : > { %s488_s24 = scalar_select %p487_p10, %s4587_s22, 1  ;;  %3801 = vmatpush1.bf16.msra.mxu0 %v3800_v13  ;;  %v3814_v34 = vpack.c.bf16 %v3157_v30, %v3155_v29  ;;  %v3159_v39 = vld [vmem:[%s6410_s1 + $0x248] sm:$0xff]  ;;  %v3161_v40 = vld [vmem:[%s6410_s1 + $0x258] sm:$0xff]  ;;  %v3816_v42 = vpack.c.bf16 %v3156_v36, %v3154_v35  ;;  %v3158_v44 = vld [vmem:[%s6410_s1 + $0x240] sm:$0xff] }
  0x1a   : > { %3803 = vmatprep.subr.bf16.mxu0 %v3802_v14  ;;  %v3818_v43 = vpack.c.bf16 %v3161_v40, %v3159_v39  ;;  %v3160_v45 = vld [vmem:[%s6410_s1 + $0x250] sm:$0xff]  ;;  %v3163_v46 = vld [vmem:[%s6410_s1 + $0x268] sm:$0xff]  ;;  %v3165_v47 = vld [vmem:[%s6410_s1 + $0x278] sm:$0xff]  ;;  %s4485_s22 = smov [#allocation2]  }
  0x1b   : > { %s3516_s27 = sshll.u32 %s488_s24, 6  ;;  %v3820_v48 = vpack.c.bf16 %v3160_v45, %v3158_v44  ;;  %v3822_v49 = vpack.c.bf16 %v3165_v47, %v3163_v46  ;;  %v3162_v50 = vld [vmem:[%s6410_s1 + $0x260] sm:$0xff]  ;;  %v3164_v51 = vld [vmem:[%s6410_s1 + $0x270] sm:$0xff]  ;;  %v3167_v52 = vld [vmem:[%s6410_s1 + $0x288] sm:$0xff]  ;;  %s4420_s16 = sshll.u32 %s4485_s22, 4  ;;  %s4421_s16 = int_to_ptr.vmem [resolvable:$false] %s4420_s16 }
  0x1c   : > { %s4679_s25 = scalar_lea.vmem %s6409_s0, %s3516_s27  ;;  %v3169_v53 = vld [vmem:[%s6410_s1 + $0x298] sm:$0xff]  ;;  %v3824_v54 = vpack.c.bf16 %v3164_v51, %v3162_v50  ;;  %v3166_v56 = vld [vmem:[%s6410_s1 + $0x280] sm:$0xff]  ;;  %v3168_v57 = vld [vmem:[%s6410_s1 + $0x290] sm:$0xff]  ;;  %s4422_s17 = scalar_lea.vmem %s4421_s16, 32 }
  0x1d   : > { %3805 = vmatpush1.bf16.msra.mxu0 %v3804_v19  ;;  %v4688_v32 = vld [vmem:[%s4679_s25 + $0x8] sm:$0xff]  ;;  %v4691_v33 = vld [vmem:[%s4679_s25 + $0x18] sm:$0xff]  ;;  %v3826_v55 = vpack.c.bf16 %v3169_v53, %v3167_v52  ;;  %v3828_v60 = vpack.c.bf16 %v3168_v57, %v3166_v56  ;;  %v3170_v62 = vld [vmem:[%s6410_s1 + $0x2a0] sm:$0xff] }
  0x1e   : > { %3807 = vmatprep.subr.bf16.mxu0 %v3806_v20  ;;  %v609_v37 = vrot.slane %v4688_v32, 1  ;;  %v610_v38 = vrot.slane %v4691_v33, 1  ;;  %v3171_v58 = vld [vmem:[%s6410_s1 + $0x2a8] sm:$0xff]  ;;  %v3173_v59 = vld [vmem:[%s6410_s1 + $0x2b8] sm:$0xff]  ;;  %v3172_v63 = vld [vmem:[%s6410_s1 + $0x2b0] sm:$0xff] }
  0x1f   : > { %v3830_v61 = vpack.c.bf16 %v3173_v59, %v3171_v58  ;;  %v3175_v0 = vld [vmem:[%s6410_s1 + $0x2c8] sm:$0xff]  ;;  %v3177_v1 = vld [vmem:[%s6410_s1 + $0x2d8] sm:$0xff]  ;;  %v3832_v2 = vpack.c.bf16 %v3172_v63, %v3170_v62  ;;  %v3174_v4 = vld [vmem:[%s6410_s1 + $0x2c0] sm:$0xff] }
  0x20   : > { %v611_v41 = vsel %vm605_vm0, %v609_v37, %v610_v38  ;;  %v3834_v3 = vpack.c.bf16 %v3177_v1, %v3175_v0  ;;  %v3176_v5 = vld [vmem:[%s6410_s1 + $0x2d0] sm:$0xff]  ;;  %v3179_v6 = vld [vmem:[%s6410_s1 + $0x2e8] sm:$0xff]  ;;  %v3181_v7 = vld [vmem:[%s6410_s1 + $0x2f8] sm:$0xff] }
  0x21   : > { %3809 = vmatpush1.bf16.msra.mxu0 %v3808_v25  ;;  %3182 = vmatprep.mubr.msk.f32.mxu0 %vm624_vm1, %v611_v41  ;;  %v3836_v8 = vpack.c.bf16 %v3176_v5, %v3174_v4  ;;  %v3178_v9 = vld [vmem:[%s6410_s1 + $0x2e0] sm:$0xff]  ;;  %v3838_v10 = vpack.c.bf16 %v3181_v7, %v3179_v6  ;;  %v3180_v11 = vld [vmem:[%s6410_s1 + $0x2f0] sm:$0xff]  ;;  %v501_v14 = vld [vmem:[%s6410_s1 + $0x8] sm:$0xff] }
  0x22   : > { %3811 = vmatprep.subr.bf16.mxu0 %v3810_v26  ;;  %v4778_v12 = vld [vmem:[%s4679_s25] sm:$0xff]  ;;  %v4781_v13 = vld [vmem:[%s4679_s25 + $0x10] sm:$0xff]  ;;  %v503_v15 = vld [vmem:[%s6410_s1 + $0x18] sm:$0xff]  ;;  %v3840_v17 = vpack.c.bf16 %v3180_v11, %v3178_v9 }
  0x23   : > { %v4790_v16 = vld [vmem:[%s4679_s25 + $0x28] sm:$0xff]  ;;  %v606_v18 = vrot.slane %v4778_v12, 1  ;;  %v607_v19 = vrot.slane %v4781_v13, 1  ;;  %v3842_v20 = vpack.c.bf16 %v503_v15, %v501_v14  ;;  %v500_v21 = vld [vmem:[%s6410_s1] sm:$0xff]  ;;  %v502_v22 = vld [vmem:[%s6410_s1 + $0x10] sm:$0xff] }
  0x24   : > { %v614_v23 = vrot.slane %v4790_v16, 1  ;;  %v4802_v24 = vld [vmem:[%s4679_s25 + $0x20] sm:$0xff]  ;;  %v505_v25 = vld [vmem:[%s6410_s1 + $0x28] sm:$0xff]  ;;  %v507_v26 = vld [vmem:[%s6410_s1 + $0x38] sm:$0xff]  ;;  %v3844_v29 = vpack.c.bf16 %v502_v22, %v500_v21 }
  0x25   : > { %3813 = vmatpush1.bf16.msra.mxu0 %v3812_v31  ;;  %v4811_v27 = vld [vmem:[%s4679_s25 + $0x38] sm:$0xff]  ;;  %v608_v28 = vsel %vm605_vm0, %v606_v18, %v607_v19  ;;  %v612_v30 = vrot.slane %v4802_v24, 1  ;;  %v3846_v31 = vpack.c.bf16 %v507_v26, %v505_v25  ;;  %v506_v35 = vld [vmem:[%s6410_s1 + $0x30] sm:$0xff]  ;;  %v509_v40 = vld [vmem:[%s6410_s1 + $0x48] sm:$0xff] }
  0x26   : > { %3815 = vmatprep.subr.bf16.mxu0 %v3814_v34  ;;  %v504_v34 = vld [vmem:[%s6410_s1 + $0x20] sm:$0xff]  ;;  %v615_v36 = vsel %vm605_vm0, %v610_v38, %v614_v23  ;;  %v618_v37 = vrot.slane %v4811_v27, 1  ;;  %v4826_v39 = vld [vmem:[%s4679_s25 + $0x30] sm:$0xff]  ;;  %v511_v41 = vld [vmem:[%s6410_s1 + $0x58] sm:$0xff]  ;;  %s4482_s25 = smov 127  }
  0x27   : > { %v616_v38 = vrot.slane %v4826_v39, 1  ;;  %v3850_v44 = vpack.c.bf16 %v511_v41, %v509_v40  ;;  %v508_v45 = vld [vmem:[%s6410_s1 + $0x40] sm:$0xff]  ;;  %v510_v46 = vld [vmem:[%s6410_s1 + $0x50] sm:$0xff]  ;;  %v519_v56 = vld [vmem:[%s6410_s1 + $0x98] sm:$0xff] }
  0x28   : > { %v619_v47 = vsel %vm605_vm0, %v614_v23, %v618_v37  ;;  %v3852_v50 = vpack.c.bf16 %v510_v46, %v508_v45  ;;  %v512_v53 = vld [vmem:[%s6410_s1 + $0x60] sm:$0xff]  ;;  %v523_v62 = vld [vmem:[%s6410_s1 + $0xb8] sm:$0xff]  ;;  %v529_v9 = vld [vmem:[%s6410_s1 + $0xe8] sm:$0xff] }
  0x29   : > { %3817 = vmatpush1.bf16.msra.mxu0 %v3816_v42  ;;  %v3848_v42 = vpack.c.bf16 %v506_v35, %v504_v34  ;;  %v617_v51 = vsel %vm605_vm0, %v612_v30, %v616_v38  ;;  %v516_v59 = vld [vmem:[%s6410_s1 + $0x80] sm:$0xff]  ;;  %v527_v4 = vld [vmem:[%s6410_s1 + $0xd8] sm:$0xff]  ;;  %v533_v18 = vld [vmem:[%s6410_s1 + $0x108] sm:$0xff] }
  0x2a   : > { %3819 = vmatprep.subr.bf16.mxu0 %v3818_v43  ;;  %v613_v43 = vsel %vm605_vm0, %v607_v19, %v612_v30  ;;  %v520_v1 = vld [vmem:[%s6410_s1 + $0xa0] sm:$0xff]  ;;  %v535_v19 = vld [vmem:[%s6410_s1 + $0x118] sm:$0xff]  ;;  %v534_v23 = vld [vmem:[%s6410_s1 + $0x110] sm:$0xff] }
  0x2b   : > { %v524_v7 = vld [vmem:[%s6410_s1 + $0xc0] sm:$0xff]  ;;  %v3874_v21 = vpack.c.bf16 %v535_v19, %v533_v18  ;;  %v537_v25 = vld [vmem:[%s6410_s1 + $0x128] sm:$0xff]  ;;  %v539_v26 = vld [vmem:[%s6410_s1 + $0x138] sm:$0xff] }
  0x2c   : > { %v528_v15 = vld [vmem:[%s6410_s1 + $0xe0] sm:$0xff]  ;;  %v541_v34 = vld [vmem:[%s6410_s1 + $0x148] sm:$0xff]  ;;  %v543_v35 = vld [vmem:[%s6410_s1 + $0x158] sm:$0xff] }
  0x2d   : > { %3821 = vmatpush1.bf16.msra.mxu0 %v3820_v48  ;;  %v513_v48 = vld [vmem:[%s6410_s1 + $0x68] sm:$0xff]  ;;  %v532_v22 = vld [vmem:[%s6410_s1 + $0x100] sm:$0xff]  ;;  %v542_v41 = vld [vmem:[%s6410_s1 + $0x150] sm:$0xff] }
  0x2e   : > { %3823 = vmatprep.subr.bf16.mxu0 %v3822_v49  ;;  %v515_v49 = vld [vmem:[%s6410_s1 + $0x78] sm:$0xff]  ;;  %v536_v30 = vld [vmem:[%s6410_s1 + $0x120] sm:$0xff]  ;;  %v546_v46 = vld [vmem:[%s6410_s1 + $0x170] sm:$0xff] }
  0x2f   : > { %v3854_v52 = vpack.c.bf16 %v515_v49, %v513_v48  ;;  %v540_v40 = vld [vmem:[%s6410_s1 + $0x140] sm:$0xff]  ;;  %v3193_v48 = vld [vmem:[%s6410_s1 + $0x318] sm:$0xff]  ;;  %v3211_v19 = vld [vmem:[%s6410_s1 + $0x3a8] sm:$0xff] }
  0x30   : > { %v544_v45 = vld [vmem:[%s6410_s1 + $0x160] sm:$0xff]  ;;  %vm4069_vm10 = vmpackc.low %vm1561_vm8, %vm4483_vm9 }
  0x31   : > { %3825 = vmatpush1.bf16.msra.mxu0 %v3824_v54  ;;  %v514_v54 = vld [vmem:[%s6410_s1 + $0x70] sm:$0xff]  ;;  %v3888_v49 = vpack.c.bf16 %v546_v46, %v544_v45  ;;  %v3222_v46 = vld [vmem:[%s6410_s1 + $0x400] sm:$0xff]  ;;  %vm4203_vm12 = vmpackc.low %vm605_vm0, %vm4483_vm9 }
  0x32   : > { %3827 = vmatprep.subr.bf16.mxu0 %v3826_v55  ;;  %v517_v55 = vld [vmem:[%s6410_s1 + $0x88] sm:$0xff]  ;;  %v3856_v57 = vpack.c.bf16 %v514_v54, %v512_v53  ;;  %v3197_v54 = vld [vmem:[%s6410_s1 + $0x338] sm:$0xff] }
  0x33   : > { %v3858_v58 = vpack.c.bf16 %v519_v56, %v517_v55  ;;  %v3195_v53 = vld [vmem:[%s6410_s1 + $0x328] sm:$0xff] }
  0x34   : > { %v3894_v56 = vpack.c.bf16 %v3197_v54, %v3195_v53  ;;  %v3228_v53 = vld [vmem:[%s6410_s1 + $0x430] sm:$0xff]  ;;  %v3231_v54 = vld [vmem:[%s6410_s1 + $0x448] sm:$0xff] }
  0x35   : > { %3829 = vmatpush1.bf16.msra.mxu0 %v3828_v60  ;;  %v518_v60 = vld [vmem:[%s6410_s1 + $0x90] sm:$0xff] }
  0x36   : > { %3831 = vmatprep.subr.bf16.mxu0 %v3830_v61  ;;  %v521_v61 = vld [vmem:[%s6410_s1 + $0xa8] sm:$0xff]  ;;  %v3860_v63 = vpack.c.bf16 %v518_v60, %v516_v59  ;;  %v3201_v60 = vld [vmem:[%s6410_s1 + $0x358] sm:$0xff] }
  0x37   : > { %v3862_v0 = vpack.c.bf16 %v523_v62, %v521_v61  ;;  %v3199_v59 = vld [vmem:[%s6410_s1 + $0x348] sm:$0xff] }
  0x38   : > { %v3898_v62 = vpack.c.bf16 %v3201_v60, %v3199_v59  ;;  %v3232_v59 = vld [vmem:[%s6410_s1 + $0x450] sm:$0xff]  ;;  %v3235_v60 = vld [vmem:[%s6410_s1 + $0x468] sm:$0xff] }
  0x39   : > { %3833 = vmatpush1.bf16.msra.mxu0 %v3832_v2  ;;  %v522_v2 = vld [vmem:[%s6410_s1 + $0xb0] sm:$0xff] }
  0x3a   : > { %3835 = vmatprep.subr.bf16.mxu0 %v3834_v3  ;;  %v525_v3 = vld [vmem:[%s6410_s1 + $0xc8] sm:$0xff]  ;;  %v3864_v5 = vpack.c.bf16 %v522_v2, %v520_v1  ;;  %v3205_v2 = vld [vmem:[%s6410_s1 + $0x378] sm:$0xff] }
  0x3b   : > { %v3866_v6 = vpack.c.bf16 %v527_v4, %v525_v3  ;;  %v3203_v1 = vld [vmem:[%s6410_s1 + $0x368] sm:$0xff] }
  0x3c   : > { %v3902_v4 = vpack.c.bf16 %v3205_v2, %v3203_v1  ;;  %v3236_v1 = vld [vmem:[%s6410_s1 + $0x470] sm:$0xff]  ;;  %v3243_v2 = vld [vmem:[%s6410_s1 + $0x488] sm:$0xff] }
  0x3d   : > { %3837 = vmatpush1.bf16.msra.mxu0 %v3836_v8  ;;  %v526_v8 = vld [vmem:[%s6410_s1 + $0xd0] sm:$0xff] }
  0x3e   : > { %3839 = vmatprep.subr.bf16.mxu0 %v3838_v10  ;;  %v531_v10 = vld [vmem:[%s6410_s1 + $0xf8] sm:$0xff]  ;;  %v3868_v11 = vpack.c.bf16 %v526_v8, %v524_v7  ;;  %v872_v7 = vrot.slane %v4688_v32, 2  ;;  %v873_v8 = vrot.slane %v4691_v33, 2 }
  0x3f   : > { %v3870_v14 = vpack.c.bf16 %v531_v10, %v529_v9  ;;  %v3207_v9 = vld [vmem:[%s6410_s1 + $0x388] sm:$0xff]  ;;  %v3209_v10 = vld [vmem:[%s6410_s1 + $0x398] sm:$0xff] }
  0x40   : > { %v874_v18 = vsel %vm868_vm2, %v872_v7, %v873_v8 }
  0x41   : > { %3841 = vmatpush1.bf16.msra.mxu0 %v3840_v17  ;;  %v530_v17 = vld [vmem:[%s6410_s1 + $0xf0] sm:$0xff] }
  0x42   : > { %3843 = vmatprep.subr.bf16.mxu0 %v3842_v20  ;;  %v3872_v20 = vpack.c.bf16 %v530_v17, %v528_v15  ;;  %v3206_v15 = vld [vmem:[%s6410_s1 + $0x380] sm:$0xff]  ;;  %v3208_v17 = vld [vmem:[%s6410_s1 + $0x390] sm:$0xff] }
  0x44   : > { %698 = vmatmul.mubr.f32.vlgmr.msra.gmra.mrb[0].mxu0 %v608_v28  ;;  %v3876_v28 = vpack.c.bf16 %v534_v23, %v532_v22  ;;  %v3210_v23 = vld [vmem:[%s6410_s1 + $0x3a0] sm:$0xff] }
  0x45   : > { %3845 = vmatpush1.bf16.msra.mxu0 %v3844_v29  ;;  %3183 = vmatprep.mubr.msk.f32.mxu0 %vm624_vm1, %v615_v36  ;;  %v3878_v29 = vpack.c.bf16 %v539_v26, %v537_v25  ;;  %v3212_v25 = vld [vmem:[%s6410_s1 + $0x3b0] sm:$0xff]  ;;  %v3215_v26 = vld [vmem:[%s6410_s1 + $0x3c8] sm:$0xff] }
  0x46   : > { %3847 = vmatprep.subr.bf16.mxu0 %v3846_v31  ;;  %v538_v31 = vld [vmem:[%s6410_s1 + $0x130] sm:$0xff] }
  0x47   : > { %v3880_v36 = vpack.c.bf16 %v538_v31, %v536_v30  ;;  %v3214_v31 = vld [vmem:[%s6410_s1 + $0x3c0] sm:$0xff] }
  0x48   : > { %704 = vmatmul.mubr.f32.gmra.mrb[2].mxu0 %v613_v43  ;;  %v547_v43 = vld [vmem:[%s6410_s1 + $0x178] sm:$0xff] }
  0x49   : > { %3849 = vmatpush1.bf16.msra.mxu0 %v3848_v42  ;;  %3184 = vmatprep.mubr.msk.f32.mxu0 %vm624_vm1, %v619_v47  ;;  %v545_v42 = vld [vmem:[%s6410_s1 + $0x168] sm:$0xff] }
  0x4a   : > { %3851 = vmatprep.subr.bf16.mxu0 %v3850_v44  ;;  %v3886_v44 = vpack.c.bf16 %v547_v43, %v545_v42  ;;  %v3191_v47 = vld [vmem:[%s6410_s1 + $0x308] sm:$0xff]  ;;  %v3220_v42 = vld [vmem:[%s6410_s1 + $0x3f0] sm:$0xff] }
  0x4b   : > { %v3223_v43 = vld [vmem:[%s6410_s1 + $0x408] sm:$0xff] }
  0x4c   : > { %710 = vmatmul.mubr.f32.gmra.mrb[4].mxu0 %v617_v51  ;;  %v3190_v51 = vld [vmem:[%s6410_s1 + $0x300] sm:$0xff] }
  0x4d   : > { %3853 = vmatpush1.bf16.msra.mxu0 %v3852_v50  ;;  %3185 = vmatprep.mubr.msk.f32.mxu0 %vm624_vm1, %v618_v37  ;;  %v3882_v37 = vpack.c.bf16 %v543_v35, %v541_v34  ;;  %v3890_v50 = vpack.c.bf16 %v3193_v48, %v3191_v47  ;;  %v3216_v34 = vld [vmem:[%s6410_s1 + $0x3d0] sm:$0xff]  ;;  %v3219_v35 = vld [vmem:[%s6410_s1 + $0x3e8] sm:$0xff] }
  0x4e   : > { %3855 = vmatprep.subr.bf16.mxu0 %v3854_v52  ;;  %v3192_v52 = vld [vmem:[%s6410_s1 + $0x310] sm:$0xff]  ;;  %v3227_v48 = vld [vmem:[%s6410_s1 + $0x428] sm:$0xff] }
  0x4f   : > { %v3892_v55 = vpack.c.bf16 %v3192_v52, %v3190_v51  ;;  %v3224_v47 = vld [vmem:[%s6410_s1 + $0x410] sm:$0xff]  ;;  %v3226_v52 = vld [vmem:[%s6410_s1 + $0x420] sm:$0xff] }
  0x50   : > { %716 = vmatmul.mubr.f32.gmra.mrb[6].mxu0 %v616_v38  ;;  %v3884_v38 = vpack.c.bf16 %v542_v41, %v540_v40  ;;  %v3218_v41 = vld [vmem:[%s6410_s1 + $0x3e0] sm:$0xff] }
  0x51   : > { %3857 = vmatpush1.bf16.msra.mxu0 %v3856_v57  ;;  %3186 = vmatprep.mubr.msk.f32.mxu0 %vm624_vm1, %v4688_v32  ;;  %v3194_v57 = vld [vmem:[%s6410_s1 + $0x320] sm:$0xff] }
  0x52   : > { %3859 = vmatprep.subr.bf16.mxu0 %v3858_v58  ;;  %v3196_v58 = vld [vmem:[%s6410_s1 + $0x330] sm:$0xff] }
  0x53   : > { %v3896_v61 = vpack.c.bf16 %v3196_v58, %v3194_v57  ;;  %v3230_v58 = vld [vmem:[%s6410_s1 + $0x440] sm:$0xff] }
  0x55   : > { %3861 = vmatpush1.bf16.msra.mxu0 %v3860_v63  ;;  %v3198_v63 = vld [vmem:[%s6410_s1 + $0x340] sm:$0xff] }
  0x56   : > { %3863 = vmatprep.subr.bf16.mxu0 %v3862_v0  ;;  %v3200_v0 = vld [vmem:[%s6410_s1 + $0x350] sm:$0xff] }
  0x57   : > { %v3900_v3 = vpack.c.bf16 %v3200_v0, %v3198_v63  ;;  %v3234_v0 = vld [vmem:[%s6410_s1 + $0x460] sm:$0xff] }
  0x59   : > { %3865 = vmatpush1.bf16.msra.mxu0 %v3864_v5  ;;  %v3202_v5 = vld [vmem:[%s6410_s1 + $0x360] sm:$0xff] }
  0x5a   : > { %3867 = vmatprep.subr.bf16.mxu0 %v3866_v6  ;;  %v3204_v6 = vld [vmem:[%s6410_s1 + $0x370] sm:$0xff] }
  0x5d   : > { %3869 = vmatpush1.bf16.msra.mxu0 %v3868_v11  ;;  %v3904_v11 = vpack.c.bf16 %v3204_v6, %v3202_v5  ;;  %v869_v5 = vrot.slane %v4778_v12, 2  ;;  %v870_v6 = vrot.slane %v4781_v13, 2 }
  0x5e   : > { %3871 = vmatprep.subr.bf16.mxu0 %v3870_v14  ;;  %v3906_v14 = vpack.c.bf16 %v3209_v10, %v3207_v9  ;;  %v3242_v9 = vld [vmem:[%s6410_s1 + $0x480] sm:$0xff]  ;;  %v3244_v10 = vld [vmem:[%s6410_s1 + $0x490] sm:$0xff] }
  0x61   : > { %3873 = vmatpush1.bf16.msra.mxu0 %v3872_v20  ;;  %v3213_v20 = vld [vmem:[%s6410_s1 + $0x3b8] sm:$0xff] }
  0x62   : > { %3875 = vmatprep.subr.bf16.mxu0 %v3874_v21  ;;  %v3908_v21 = vpack.c.bf16 %v3208_v17, %v3206_v15  ;;  %v3910_v22 = vpack.c.bf16 %v3213_v20, %v3211_v19  ;;  %v3249_v15 = vld [vmem:[%s6410_s1 + $0x4b8] sm:$0xff]  ;;  %v871_v17 = vsel %vm868_vm2, %v869_v5, %v870_v6  ;;  %v875_v19 = vrot.slane %v4802_v24, 2 }
  0x65   : > { %3877 = vmatpush1.bf16.msra.mxu0 %v3876_v28  ;;  %v3217_v28 = vld [vmem:[%s6410_s1 + $0x3d8] sm:$0xff] }
  0x66   : > { %3879 = vmatprep.subr.bf16.mxu0 %v3878_v29  ;;  %v3912_v29 = vpack.c.bf16 %v3212_v25, %v3210_v23  ;;  %v3914_v30 = vpack.c.bf16 %v3217_v28, %v3215_v26  ;;  %v881_v25 = vrot.slane %v4811_v27, 2  ;;  %v3251_v26 = vld [vmem:[%s6410_s1 + $0x4c8] sm:$0xff]  ;;  %v3253_v28 = vld [vmem:[%s6410_s1 + $0x4d8] sm:$0xff] }
  0x69   : > { %3881 = vmatpush1.bf16.msra.mxu0 %v3880_v36  ;;  %v3221_v36 = vld [vmem:[%s6410_s1 + $0x3f8] sm:$0xff] }
  0x6a   : > { %3883 = vmatprep.subr.bf16.mxu0 %v3882_v37  ;;  %v3916_v37 = vpack.c.bf16 %v3216_v34, %v3214_v31  ;;  %v3918_v40 = vpack.c.bf16 %v3221_v36, %v3219_v35  ;;  %v879_v31 = vrot.slane %v4826_v39, 2  ;;  %v3250_v34 = vld [vmem:[%s6410_s1 + $0x4c0] sm:$0xff]  ;;  %v3252_v35 = vld [vmem:[%s6410_s1 + $0x4d0] sm:$0xff] }
  0x6d   : > { %3885 = vmatpush1.bf16.msra.mxu0 %v3884_v38  ;;  %v3225_v38 = vld [vmem:[%s6410_s1 + $0x418] sm:$0xff] }
  0x6e   : > { %3887 = vmatprep.subr.bf16.mxu0 %v3886_v44  ;;  %v3920_v44 = vpack.c.bf16 %v3220_v42, %v3218_v41  ;;  %v3922_v45 = vpack.c.bf16 %v3225_v38, %v3223_v43  ;;  %v3948_v41 = vpack.c.bf16 %v3252_v35, %v3250_v34  ;;  %v880_v42 = vsel %vm868_vm2, %v875_v19, %v879_v31  ;;  %v3254_v38 = vld [vmem:[%s6410_s1 + $0x4e0] sm:$0xff]  ;;  %v3289_v34 = vld [vmem:[%s6410_s1 + $0x5f8] sm:$0xff] }
  0x71   : > { %3889 = vmatpush1.bf16.msra.mxu0 %v3888_v49  ;;  %v3229_v49 = vld [vmem:[%s6410_s1 + $0x438] sm:$0xff] }
  0x72   : > { %3891 = vmatprep.subr.bf16.mxu0 %v3890_v50  ;;  %v3924_v50 = vpack.c.bf16 %v3224_v47, %v3222_v46  ;;  %v3926_v51 = vpack.c.bf16 %v3229_v49, %v3227_v48  ;;  %v1046_v46 = vrot.slane %v4691_v33, 3  ;;  %v3259_v47 = vld [vmem:[%s6410_s1 + $0x508] sm:$0xff]  ;;  %v3261_v48 = vld [vmem:[%s6410_s1 + $0x518] sm:$0xff] }
  0x74   : > { %795 = vmatmul.mubr.f32.vlgmr.msra.gmra.mrb[0].mxu0 %v4778_v12 }
  0x75   : > { %3893 = vmatpush1.bf16.msra.mxu0 %v3892_v55  ;;  %3187 = vmatprep.mubr.msk.f32.mxu0 %vm624_vm1, %v4691_v33  ;;  %v3233_v55 = vld [vmem:[%s6410_s1 + $0x458] sm:$0xff] }
  0x76   : > { %3895 = vmatprep.subr.bf16.mxu0 %v3894_v56  ;;  %v3928_v56 = vpack.c.bf16 %v3228_v53, %v3226_v52  ;;  %v3930_v57 = vpack.c.bf16 %v3233_v55, %v3231_v54  ;;  %v3260_v52 = vld [vmem:[%s6410_s1 + $0x510] sm:$0xff]  ;;  %v3263_v54 = vld [vmem:[%s6410_s1 + $0x528] sm:$0xff]  ;;  %v3265_v55 = vld [vmem:[%s6410_s1 + $0x538] sm:$0xff] }
  0x78   : > { %801 = vmatmul.mubr.f32.gmra.mrb[2].mxu0 %v4781_v13 }
  0x79   : > { %3897 = vmatpush1.bf16.msra.mxu0 %v3896_v61  ;;  %3188 = vmatprep.mubr.msk.f32.mxu0 %vm624_vm1, %v4790_v16  ;;  %v3237_v61 = vld [vmem:[%s6410_s1 + $0x478] sm:$0xff] }
  0x7a   : > { %3899 = vmatprep.subr.bf16.mxu0 %v3898_v62  ;;  %v3932_v62 = vpack.c.bf16 %v3232_v59, %v3230_v58  ;;  %v3934_v63 = vpack.c.bf16 %v3237_v61, %v3235_v60  ;;  %v3262_v58 = vld [vmem:[%s6410_s1 + $0x520] sm:$0xff]  ;;  %v3264_v59 = vld [vmem:[%s6410_s1 + $0x530] sm:$0xff]  ;;  %v3267_v60 = vld [vmem:[%s6410_s1 + $0x548] sm:$0xff] }
  0x7b   : > { %v3269_v61 = vld [vmem:[%s6410_s1 + $0x558] sm:$0xff] }
  0x7c   : > { %807 = vmatmul.mubr.f32.gmra.mrb[4].mxu0 %v4802_v24 }
  0x7d   : > { %3901 = vmatpush1.bf16.msra.mxu0 %v3900_v3  ;;  %3189 = vmatprep.mubr.msk.f32.mxu0 %vm624_vm1, %v4811_v27  ;;  %v3245_v3 = vld [vmem:[%s6410_s1 + $0x498] sm:$0xff] }
  0x7e   : > { %3903 = vmatprep.subr.bf16.mxu0 %v3902_v4  ;;  %v3936_v4 = vpack.c.bf16 %v3236_v1, %v3234_v0  ;;  %v3938_v7 = vpack.c.bf16 %v3245_v3, %v3243_v2  ;;  %v3266_v0 = vld [vmem:[%s6410_s1 + $0x540] sm:$0xff]  ;;  %v3268_v1 = vld [vmem:[%s6410_s1 + $0x550] sm:$0xff]  ;;  %v3271_v2 = vld [vmem:[%s6410_s1 + $0x568] sm:$0xff] }
  0x7f   : > { %v3273_v3 = vld [vmem:[%s6410_s1 + $0x578] sm:$0xff] }
  0x80   : > { %813 = vmatmul.mubr.f32.gmra.mrb[6].mxu0 %v4826_v39  ;;  %v3966_v5 = vpack.c.bf16 %v3273_v3, %v3271_v2  ;;  %v3304_v2 = vld [vmem:[%s6410_s1 + $0x650] sm:$0xff] }
  0x81   : > { %3905 = vmatpush1.bf16.msra.mxu0 %v3904_v11  ;;  %3238 = vmatprep.mubr.msk.f32.mxu0 %vm624_vm1, %v874_v18  ;;  %v877_v11 = vrot.slane %v4790_v16, 2  ;;  %v3940_v18 = vpack.c.bf16 %v3244_v10, %v3242_v9  ;;  %v3275_v9 = vld [vmem:[%s6410_s1 + $0x588] sm:$0xff]  ;;  %v3277_v10 = vld [vmem:[%s6410_s1 + $0x598] sm:$0xff] }
  0x82   : > { %3907 = vmatprep.subr.bf16.mxu0 %v3906_v14  ;;  %v3247_v14 = vld [vmem:[%s6410_s1 + $0x4a8] sm:$0xff] }
  0x83   : > { %v3942_v20 = vpack.c.bf16 %v3249_v15, %v3247_v14  ;;  %v878_v23 = vsel %vm868_vm2, %v873_v8, %v877_v11  ;;  %v3946_v8 = vpack.c.bf16 %v3253_v28, %v3251_v26  ;;  %v882_v36 = vsel %vm868_vm2, %v877_v11, %v881_v25  ;;  %v3274_v15 = vld [vmem:[%s6410_s1 + $0x580] sm:$0xff]  ;;  %v3285_v26 = vld [vmem:[%s6410_s1 + $0x5d8] sm:$0xff] }
  0x84   : > { %v3970_v14 = vpack.c.bf16 %v3277_v10, %v3275_v9  ;;  %v3306_v10 = vld [vmem:[%s6410_s1 + $0x660] sm:$0xff] }
  0x85   : > { %3909 = vmatpush1.bf16.msra.mxu0 %v3908_v21  ;;  %v3246_v21 = vld [vmem:[%s6410_s1 + $0x4a0] sm:$0xff] }
  0x86   : > { %3911 = vmatprep.subr.bf16.mxu0 %v3910_v22  ;;  %v3248_v22 = vld [vmem:[%s6410_s1 + $0x4b0] sm:$0xff] }
  0x89   : > { %3913 = vmatpush1.bf16.msra.mxu0 %v3912_v29  ;;  %v3944_v29 = vpack.c.bf16 %v3248_v22, %v3246_v21  ;;  %v3278_v22 = vld [vmem:[%s6410_s1 + $0x5a0] sm:$0xff] }
  0x8a   : > { %3915 = vmatprep.subr.bf16.mxu0 %v3914_v30  ;;  %v876_v30 = vsel %vm868_vm2, %v870_v6, %v875_v19  ;;  %v3270_v6 = vld [vmem:[%s6410_s1 + $0x560] sm:$0xff]  ;;  %v3281_v19 = vld [vmem:[%s6410_s1 + $0x5b8] sm:$0xff] }
  0x8d   : > { %3917 = vmatpush1.bf16.msra.mxu0 %v3916_v37  ;;  %v3255_v37 = vld [vmem:[%s6410_s1 + $0x4e8] sm:$0xff] }
  0x8e   : > { %3919 = vmatprep.subr.bf16.mxu0 %v3918_v40  ;;  %v3257_v40 = vld [vmem:[%s6410_s1 + $0x4f8] sm:$0xff] }
  0x8f   : > { %v3950_v43 = vpack.c.bf16 %v3257_v40, %v3255_v37  ;;  %v3286_v37 = vld [vmem:[%s6410_s1 + $0x5e0] sm:$0xff]  ;;  %v3288_v40 = vld [vmem:[%s6410_s1 + $0x5f0] sm:$0xff] }
  0x91   : > { %3921 = vmatpush1.bf16.msra.mxu0 %v3920_v44  ;;  %v3256_v44 = vld [vmem:[%s6410_s1 + $0x4f0] sm:$0xff] }
  0x92   : > { %3923 = vmatprep.subr.bf16.mxu0 %v3922_v45  ;;  %v1045_v45 = vrot.slane %v4688_v32, 3  ;;  %v3952_v49 = vpack.c.bf16 %v3256_v44, %v3254_v38  ;;  %v1042_v38 = vrot.slane %v4778_v12, 3  ;;  %v1043_v44 = vrot.slane %v4781_v13, 3 }
  0x94   : > { %v1047_v53 = vsel %vm1041_vm3, %v1045_v45, %v1046_v46 }
  0x95   : > { %3925 = vmatpush1.bf16.msra.mxu0 %v3924_v50  ;;  %v3954_v50 = vpack.c.bf16 %v3261_v48, %v3259_v47  ;;  %v3294_v47 = vld [vmem:[%s6410_s1 + $0x600] sm:$0xff]  ;;  %v3296_v48 = vld [vmem:[%s6410_s1 + $0x610] sm:$0xff] }
  0x96   : > { %3927 = vmatprep.subr.bf16.mxu0 %v3926_v51  ;;  %v3258_v51 = vld [vmem:[%s6410_s1 + $0x500] sm:$0xff] }
  0x99   : > { %3929 = vmatpush1.bf16.msra.mxu0 %v3928_v56  ;;  %v3956_v56 = vpack.c.bf16 %v3260_v52, %v3258_v51  ;;  %v3301_v51 = vld [vmem:[%s6410_s1 + $0x638] sm:$0xff]  ;;  %v1044_v52 = vsel %vm1041_vm3, %v1042_v38, %v1043_v44  ;;  %v3322_v38 = vld [vmem:[%s6410_s1 + $0x6e0] sm:$0xff] }
  0x9a   : > { %3931 = vmatprep.subr.bf16.mxu0 %v3930_v57  ;;  %v3958_v57 = vpack.c.bf16 %v3265_v55, %v3263_v54  ;;  %v1048_v54 = vrot.slane %v4802_v24, 3 }
  0x9d   : > { %3933 = vmatpush1.bf16.msra.mxu0 %v3932_v62  ;;  %v3960_v62 = vpack.c.bf16 %v3264_v59, %v3262_v58  ;;  %v1054_v59 = vrot.slane %v4811_v27, 3 }
  0x9e   : > { %3935 = vmatprep.subr.bf16.mxu0 %v3934_v63  ;;  %v3962_v63 = vpack.c.bf16 %v3269_v61, %v3267_v60  ;;  %v3303_v60 = vld [vmem:[%s6410_s1 + $0x648] sm:$0xff]  ;;  %v3305_v61 = vld [vmem:[%s6410_s1 + $0x658] sm:$0xff] }
  0xa1   : > { %3937 = vmatpush1.bf16.msra.mxu0 %v3936_v4  ;;  %v3964_v4 = vpack.c.bf16 %v3268_v1, %v3266_v0  ;;  %v1052_v0 = vrot.slane %v4826_v39, 3  ;;  %v3302_v1 = vld [vmem:[%s6410_s1 + $0x640] sm:$0xff] }
  0xa2   : > { %3939 = vmatprep.subr.bf16.mxu0 %v3938_v7  ;;  %v3272_v7 = vld [vmem:[%s6410_s1 + $0x570] sm:$0xff] }
  0xa3   : > { %v3968_v11 = vpack.c.bf16 %v3272_v7, %v3270_v6  ;;  %v3996_v6 = vpack.c.bf16 %v3304_v2, %v3302_v1  ;;  %v1053_v7 = vsel %vm1041_vm3, %v1048_v54, %v1052_v0 }
  0xa4   : > { %960 = vmatmul.mubr.f32.vlgmr.msra.gmra.mrb[0].mxu0 %v871_v17  ;;  %v3276_v17 = vld [vmem:[%s6410_s1 + $0x590] sm:$0xff] }
  0xa5   : > { %3941 = vmatpush1.bf16.msra.mxu0 %v3940_v18  ;;  %3239 = vmatprep.mubr.msk.f32.mxu0 %vm624_vm1, %v878_v23  ;;  %v3279_v18 = vld [vmem:[%s6410_s1 + $0x5a8] sm:$0xff]  ;;  %v3280_v23 = vld [vmem:[%s6410_s1 + $0x5b0] sm:$0xff] }
  0xa6   : > { %3943 = vmatprep.subr.bf16.mxu0 %v3942_v20  ;;  %v3972_v20 = vpack.c.bf16 %v3276_v17, %v3274_v15  ;;  %v3974_v21 = vpack.c.bf16 %v3281_v19, %v3279_v18  ;;  %v3976_v28 = vpack.c.bf16 %v3280_v23, %v3278_v22  ;;  %v1219_v15 = vrot.slane %v4691_v33, 4  ;;  %v3311_v17 = vld [vmem:[%s6410_s1 + $0x688] sm:$0xff]  ;;  %v3313_v18 = vld [vmem:[%s6410_s1 + $0x698] sm:$0xff]  ;;  %v1411_v33 = vld [vmem:[%s6412_s3] sm:$0xff] }
  0xa7   : > { %v3315_v23 = vld [vmem:[%s6410_s1 + $0x6a8] sm:$0xff] }
  0xa8   : > { %966 = vmatmul.mubr.f32.gmra.mrb[2].mxu0 %v876_v30  ;;  %v3282_v30 = vld [vmem:[%s6410_s1 + $0x5c0] sm:$0xff] }
  0xa9   : > { %3945 = vmatpush1.bf16.msra.mxu0 %v3944_v29  ;;  %3240 = vmatprep.mubr.msk.f32.mxu0 %vm624_vm1, %v882_v36 }
  0xaa   : > { %3947 = vmatprep.subr.bf16.mxu0 %v3946_v8  ;;  %v3287_v8 = vld [vmem:[%s6410_s1 + $0x5e8] sm:$0xff] }
  0xab   : > { %v3982_v36 = vpack.c.bf16 %v3289_v34, %v3287_v8  ;;  %v3321_v8 = vld [vmem:[%s6410_s1 + $0x6d8] sm:$0xff] }
  0xac   : > { %972 = vmatmul.mubr.f32.gmra.mrb[4].mxu0 %v880_v42  ;;  %v3297_v42 = vld [vmem:[%s6410_s1 + $0x618] sm:$0xff] }
  0xad   : > { %3949 = vmatpush1.bf16.msra.mxu0 %v3948_v41  ;;  %3241 = vmatprep.mubr.msk.f32.mxu0 %vm624_vm1, %v881_v25  ;;  %v3283_v25 = vld [vmem:[%s6410_s1 + $0x5c8] sm:$0xff] }
  0xae   : > { %3951 = vmatprep.subr.bf16.mxu0 %v3950_v43  ;;  %v3978_v29 = vpack.c.bf16 %v3285_v26, %v3283_v25  ;;  %v3295_v41 = vld [vmem:[%s6410_s1 + $0x608] sm:$0xff]  ;;  %v3984_v43 = vpack.c.bf16 %v3288_v40, %v3286_v37  ;;  %v3317_v25 = vld [vmem:[%s6410_s1 + $0x6b8] sm:$0xff]  ;;  %v3320_v37 = vld [vmem:[%s6410_s1 + $0x6d0] sm:$0xff] }
  0xaf   : > { %v3986_v45 = vpack.c.bf16 %v3297_v42, %v3295_v41  ;;  %v3323_v40 = vld [vmem:[%s6410_s1 + $0x6e8] sm:$0xff]  ;;  %v3325_v41 = vld [vmem:[%s6410_s1 + $0x6f8] sm:$0xff] }
  0xb0   : > { %978 = vmatmul.mubr.f32.gmra.mrb[6].mxu0 %v879_v31  ;;  %v3284_v31 = vld [vmem:[%s6410_s1 + $0x5d0] sm:$0xff] }
  0xb1   : > { %3953 = vmatpush1.bf16.msra.mxu0 %v3952_v49  ;;  %3290 = vmatprep.mubr.msk.f32.mxu0 %vm624_vm1, %v1047_v53  ;;  %v3980_v35 = vpack.c.bf16 %v3284_v31, %v3282_v30  ;;  %v1050_v49 = vrot.slane %v4790_v16, 3  ;;  %v3988_v53 = vpack.c.bf16 %v3296_v48, %v3294_v47  ;;  %v3316_v30 = vld [vmem:[%s6410_s1 + $0x6b0] sm:$0xff]  ;;  %v3319_v31 = vld [vmem:[%s6410_s1 + $0x6c8] sm:$0xff]  ;;  %v3329_v47 = vld [vmem:[%s6410_s1 + $0x718] sm:$0xff] }
  0xb2   : > { %3955 = vmatprep.subr.bf16.mxu0 %v3954_v50  ;;  %v3299_v50 = vld [vmem:[%s6410_s1 + $0x628] sm:$0xff] }
  0xb3   : > { %v3990_v55 = vpack.c.bf16 %v3301_v51, %v3299_v50  ;;  %v1051_v58 = vsel %vm1041_vm3, %v1046_v46, %v1050_v49  ;;  %v3994_v46 = vpack.c.bf16 %v3305_v61, %v3303_v60  ;;  %v1055_v3 = vsel %vm1041_vm3, %v1050_v49, %v1054_v59  ;;  %v3326_v50 = vld [vmem:[%s6410_s1 + $0x700] sm:$0xff]  ;;  %v3328_v51 = vld [vmem:[%s6410_s1 + $0x710] sm:$0xff] }
  0xb5   : > { %3957 = vmatpush1.bf16.msra.mxu0 %v3956_v56  ;;  %v3298_v56 = vld [vmem:[%s6410_s1 + $0x620] sm:$0xff] }
  0xb6   : > { %3959 = vmatprep.subr.bf16.mxu0 %v3958_v57  ;;  %v3300_v57 = vld [vmem:[%s6410_s1 + $0x630] sm:$0xff] }
  0xb9   : > { %3961 = vmatpush1.bf16.msra.mxu0 %v3960_v62  ;;  %v3992_v62 = vpack.c.bf16 %v3300_v57, %v3298_v56  ;;  %v3330_v56 = vld [vmem:[%s6410_s1 + $0x720] sm:$0xff]  ;;  %v3332_v57 = vld [vmem:[%s6410_s1 + $0x730] sm:$0xff] }
  0xba   : > { %3963 = vmatprep.subr.bf16.mxu0 %v3962_v63  ;;  %v1049_v63 = vsel %vm1041_vm3, %v1043_v44, %v1048_v54  ;;  %v3324_v44 = vld [vmem:[%s6410_s1 + $0x6f0] sm:$0xff]  ;;  %v4020_v54 = vpack.c.bf16 %v3328_v51, %v3326_v50  ;;  %v4024_v60 = vpack.c.bf16 %v3332_v57, %v3330_v56  ;;  %v1431_v56 = vld [vmem:[%s6412_s3 + $0xa0] sm:$0x7f] }
  0xbb   : > { %v4016_v48 = vpack.c.bf16 %v3324_v44, %v3322_v38  ;;  %v1428_v38 = vld [vmem:[%s6412_s3 + $0x88] sm:$0xff] }
  0xbd   : > { %3965 = vmatpush1.bf16.msra.mxu0 %v3964_v4  ;;  %v3307_v4 = vld [vmem:[%s6410_s1 + $0x668] sm:$0xff] }
  0xbe   : > { %3967 = vmatprep.subr.bf16.mxu0 %v3966_v5  ;;  %v3309_v5 = vld [vmem:[%s6410_s1 + $0x678] sm:$0xff] }
  0xbf   : > { %v3998_v9 = vpack.c.bf16 %v3309_v5, %v3307_v4  ;;  %v3340_v4 = vld [vmem:[%s6410_s1 + $0x770] sm:$0xff] }
  0xc1   : > { %3969 = vmatpush1.bf16.msra.mxu0 %v3968_v11  ;;  %v3308_v11 = vld [vmem:[%s6410_s1 + $0x670] sm:$0xff] }
  0xc2   : > { %3971 = vmatprep.subr.bf16.mxu0 %v3970_v14  ;;  %v1218_v14 = vrot.slane %v4688_v32, 4  ;;  %v4000_v19 = vpack.c.bf16 %v3308_v11, %v3306_v10  ;;  %v3310_v32 = vld [vmem:[%s6410_s1 + $0x680] sm:$0xff]  ;;  %v1221_v11 = vrot.slane %v4802_v24, 4 }
  0xc4   : > { %v1220_v22 = vsel %vm1214_vm4, %v1218_v14, %v1219_v15 }
  0xc5   : > { %3973 = vmatpush1.bf16.msra.mxu0 %v3972_v20  ;;  %v4002_v20 = vpack.c.bf16 %v3313_v18, %v3311_v17  ;;  %v1227_v17 = vrot.slane %v4811_v27, 4  ;;  %v1412_v27 = vld [vmem:[%s6412_s3 + $0x8] sm:$0xff] }
  0xc6   : > { %3975 = vmatprep.subr.bf16.mxu0 %v3974_v21  ;;  %v3312_v21 = vld [vmem:[%s6410_s1 + $0x690] sm:$0xff]  ;;  %v4035_v18 = vpack.c.bf16 %v1412_v27, %v1411_v33 }
  0xc7   : > { %v4004_v26 = vpack.c.bf16 %v3312_v21, %v3310_v32  ;;  %v1415_v32 = vld [vmem:[%s6412_s3 + $0x20] sm:$0xff]  ;;  %v1416_v21 = vld [vmem:[%s6412_s3 + $0x28] sm:$0xff] }
  0xc9   : > { %3977 = vmatpush1.bf16.msra.mxu0 %v3976_v28  ;;  %v4006_v28 = vpack.c.bf16 %v3317_v25, %v3315_v23  ;;  %v1417_v23 = vld [vmem:[%s6412_s3 + $0x30] sm:$0xff]  ;;  %v1418_v25 = vld [vmem:[%s6412_s3 + $0x38] sm:$0xff] }
  0xca   : > { %3979 = vmatprep.subr.bf16.mxu0 %v3978_v29  ;;  %v3314_v29 = vld [vmem:[%s6410_s1 + $0x6a0] sm:$0xff] }
  0xcb   : > { %v4008_v34 = vpack.c.bf16 %v3316_v30, %v3314_v29  ;;  %v1420_v29 = vld [vmem:[%s6412_s3 + $0x48] sm:$0xff] }
  0xcd   : > { %3981 = vmatpush1.bf16.msra.mxu0 %v3980_v35  ;;  %v4010_v35 = vpack.c.bf16 %v3321_v8, %v3319_v31  ;;  %v1421_v31 = vld [vmem:[%s6412_s3 + $0x50] sm:$0xff]  ;;  %v1422_v8 = vld [vmem:[%s6412_s3 + $0x58] sm:$0xff] }
  0xce   : > { %3983 = vmatprep.subr.bf16.mxu0 %v3982_v36  ;;  %v3318_v36 = vld [vmem:[%s6410_s1 + $0x6c0] sm:$0xff] }
  0xcf   : > { %v4012_v42 = vpack.c.bf16 %v3320_v37, %v3318_v36  ;;  %v1424_v36 = vld [vmem:[%s6412_s3 + $0x68] sm:$0xff] }
  0xd1   : > { %3985 = vmatpush1.bf16.msra.mxu0 %v3984_v43  ;;  %v4014_v43 = vpack.c.bf16 %v3325_v41, %v3323_v40  ;;  %v1425_v40 = vld [vmem:[%s6412_s3 + $0x70] sm:$0xff]  ;;  %v1426_v41 = vld [vmem:[%s6412_s3 + $0x78] sm:$0xff] }
  0xd2   : > { %3987 = vmatprep.subr.bf16.mxu0 %v3986_v45  ;;  %v3327_v45 = vld [vmem:[%s6410_s1 + $0x708] sm:$0xff] }
  0xd3   : > { %v4018_v49 = vpack.c.bf16 %v3329_v47, %v3327_v45  ;;  %v1340_v45 = vlaneseq }
  0xd4   : > { %1133 = vmatmul.mubr.f32.vlgmr.msra.gmra.mrb[0].mxu0 %v1044_v52  ;;  %v3331_v52 = vld [vmem:[%s6410_s1 + $0x728] sm:$0xff] }
  0xd5   : > { %3989 = vmatpush1.bf16.msra.mxu0 %v3988_v53  ;;  %3291 = vmatprep.mubr.msk.f32.mxu0 %vm624_vm1, %v1051_v58  ;;  %v3333_v53 = vld [vmem:[%s6410_s1 + $0x738] sm:$0xff]  ;;  %v3335_v58 = vld [vmem:[%s6410_s1 + $0x748] sm:$0xff]  ;;  %v5530_v47 = vshrl.u32 %v1340_v45, 7 }
  0xd6   : > { %3991 = vmatprep.subr.bf16.mxu0 %v3990_v55  ;;  %v4022_v55 = vpack.c.bf16 %v3333_v53, %v3331_v52  ;;  %v1338_v52 = vld [vmem:[%s6411_s2] sm:$0x3] }
  0xd7   : > { %v1342_v51 = vsub.s32 0, %v5530_v47  ;;  %v1346_v53 = vsub.s32 1, %v5530_v47 }
  0xd8   : > { %1139 = vmatmul.mubr.f32.gmra.mrb[2].mxu0 %v1049_v63  ;;  %v3336_v63 = vld [vmem:[%s6410_s1 + $0x750] sm:$0xff] }
  0xd9   : > { %3993 = vmatpush1.bf16.msra.mxu0 %v3992_v62  ;;  %3292 = vmatprep.mubr.msk.f32.mxu0 %vm624_vm1, %v1055_v3  ;;  %v3334_v62 = vld [vmem:[%s6410_s1 + $0x740] sm:$0xff]  ;;  %v1347_v57 = vrot.slane %v1338_v52, %v1346_v53 }
  0xda   : > { %3995 = vmatprep.subr.bf16.mxu0 %v3994_v46  ;;  %v3341_v46 = vld [vmem:[%s6410_s1 + $0x778] sm:$0xff]  ;;  %v4028_v1 = vpack.c.bf16 %v3336_v63, %v3334_v62  ;;  %v3338_v3 = vld [vmem:[%s6410_s1 + $0x760] sm:$0xff] }
  0xdb   : > { %v4032_v5 = vpack.c.bf16 %v3340_v4, %v3338_v3 }
  0xdc   : > { %1145 = vmatmul.mubr.f32.gmra.mrb[4].mxu0 %v1053_v7  ;;  %v1216_v7 = vrot.slane %v4781_v13, 4  ;;  %v1225_v13 = vrot.slane %v4826_v39, 4  ;;  %v1413_v39 = vld [vmem:[%s6412_s3 + $0x10] sm:$0xff] }
  0xdd   : > { %3997 = vmatpush1.bf16.msra.mxu0 %v3996_v6  ;;  %3293 = vmatprep.mubr.msk.f32.mxu0 %vm624_vm1, %v1054_v59  ;;  %v3337_v59 = vld [vmem:[%s6410_s1 + $0x758] sm:$0xff]  ;;  %v1215_v6 = vrot.slane %v4778_v12, 4 }
  0xde   : > { %3999 = vmatprep.subr.bf16.mxu0 %v3998_v9  ;;  %v4026_v61 = vpack.c.bf16 %v3337_v59, %v3335_v58  ;;  %v1223_v9 = vrot.slane %v4790_v16, 4  ;;  %v1222_v12 = vsel %vm1214_vm4, %v1216_v7, %v1221_v11  ;;  %v1226_v24 = vsel %vm1214_vm4, %v1221_v11, %v1225_v13 }
  0xdf   : > { %v1217_v10 = vsel %vm1214_vm4, %v1215_v6, %v1216_v7 }
  0xe0   : > { %1151 = vmatmul.mubr.f32.gmra.mrb[6].mxu0 %v1052_v0  ;;  %v3339_v0 = vld [vmem:[%s6410_s1 + $0x768] sm:$0xff]  ;;  %v1224_v14 = vsel %vm1214_vm4, %v1219_v15, %v1223_v9  ;;  %v1228_v16 = vsel %vm1214_vm4, %v1223_v9, %v1227_v17  ;;  %v4480_v15 = vmov 0.0|0.0  }
  0xe1   : > { %4001 = vmatpush1.bf16.msra.mxu0 %v4000_v19  ;;  %3342 = vmatprep.mubr.msk.f32.mxu0 %vm624_vm1, %v1220_v22  ;;  %v4030_v2 = vpack.c.bf16 %v3341_v46, %v3339_v0  ;;  %v1414_v19 = vld [vmem:[%s6412_s3 + $0x18] sm:$0xff]  ;;  %v4041_v22 = vpack.c.bf16 %v1416_v21, %v1415_v32 }
  0xe2   : > { %4003 = vmatprep.subr.bf16.mxu0 %v4002_v20  ;;  %4034 = vmatprep.subr.bf16.mxu1 %v4480_v15  ;;  %v4038_v20 = vpack.c.bf16 %v1414_v19, %v1413_v39 }
  0xe3   : > { %4036 = vmatpush1.bf16.msra.mxu1 %v4035_v18 }
  0xe4   : > { %4037 = vmatprep.subr.bf16.mxu1 %v4480_v15 }
  0xe5   : > { %4005 = vmatpush1.bf16.msra.mxu0 %v4004_v26  ;;  %v4044_v26 = vpack.c.bf16 %v1418_v25, %v1417_v23 }
  0xe6   : > { %4007 = vmatprep.subr.bf16.mxu0 %v4006_v28  ;;  %v1419_v28 = vld [vmem:[%s6412_s3 + $0x40] sm:$0xff] }
  0xe7   : > { %4039 = vmatpush1.bf16.msra.mxu1 %v4038_v20  ;;  %v4047_v30 = vpack.c.bf16 %v1420_v29, %v1419_v28 }
  0xe8   : > { %4040 = vmatprep.subr.bf16.mxu1 %v4480_v15 }
  0xe9   : > { %4009 = vmatpush1.bf16.msra.mxu0 %v4008_v34  ;;  %v4050_v34 = vpack.c.bf16 %v1422_v8, %v1421_v31 }
  0xea   : > { %4011 = vmatprep.subr.bf16.mxu0 %v4010_v35  ;;  %v1423_v35 = vld [vmem:[%s6412_s3 + $0x60] sm:$0xff] }
  0xeb   : > { %4042 = vmatpush1.bf16.msra.mxu1 %v4041_v22  ;;  %v4053_v37 = vpack.c.bf16 %v1424_v36, %v1423_v35 }
  0xec   : > { %4043 = vmatprep.subr.bf16.mxu1 %v4480_v15 }
  0xed   : > { %4013 = vmatpush1.bf16.msra.mxu0 %v4012_v42  ;;  %v4056_v42 = vpack.c.bf16 %v1426_v41, %v1425_v40 }
  0xee   : > { %4015 = vmatprep.subr.bf16.mxu0 %v4014_v43  ;;  %v1427_v43 = vld [vmem:[%s6412_s3 + $0x80] sm:$0xff] }
  0xef   : > { %4045 = vmatpush1.bf16.msra.mxu1 %v4044_v26  ;;  %v4059_v44 = vpack.c.bf16 %v1428_v38, %v1427_v43 }
  0xf0   : > { %4046 = vmatprep.subr.bf16.mxu1 %v4480_v15 }
  0xf1   : > { %4017 = vmatpush1.bf16.msra.mxu0 %v4016_v48  ;;  %v1429_v48 = vld [vmem:[%s6412_s3 + $0x90] sm:$0xff] }
  0xf2   : > { %4019 = vmatprep.subr.bf16.mxu0 %v4018_v49  ;;  %v1430_v49 = vld [vmem:[%s6412_s3 + $0x98] sm:$0xff] }
  0xf3   : > { %4048 = vmatpush1.bf16.msra.mxu1 %v4047_v30  ;;  %v4062_v50 = vpack.c.bf16 %v1430_v49, %v1429_v48 }
  0xf4   : > { %4049 = vmatprep.subr.bf16.mxu1 %v4480_v15 }
  0xf5   : > { %4021 = vmatpush1.bf16.msra.mxu0 %v4020_v54  ;;  %v1343_v54 = vrot.slane %v1338_v52, %v1342_v51 }
  0xf6   : > { %4023 = vmatprep.subr.bf16.mxu0 %v4022_v55  ;;  %v4481_v55 = vmov 0.0  }
  0xf7   : > { %4051 = vmatpush1.bf16.msra.mxu1 %v4050_v34 }
  0xf8   : > { %4052 = vmatprep.subr.bf16.mxu1 %v4480_v15 }
  0xf9   : > { %4025 = vmatpush1.bf16.msra.mxu0 %v4024_v60 }
  0xfa   : > { %4027 = vmatprep.subr.bf16.mxu0 %v4026_v61 }
  0xfb   : > { %4054 = vmatpush1.bf16.msra.mxu1 %v4053_v37  ;;  %v1552_v37 = vld [vmem:[%s6413_s4] sm:$0xff] }
  0xfc   : > { %4055 = vmatprep.subr.bf16.mxu1 %v4480_v15 }
  0xfd   : > { %4029 = vmatpush1.bf16.msra.mxu0 %v4028_v1 }
  0xfe   : > { %4031 = vmatprep.subr.bf16.mxu0 %v4030_v2 }
  0xff   : > { %4057 = vmatpush1.bf16.msra.mxu1 %v4056_v42 }
 0x100   : > { %4058 = vmatprep.subr.bf16.mxu1 %v4480_v15 }
 0x101   : > { %4033 = vmatpush1.bf16.msra.mxu0 %v4032_v5 }
 0x102   : > { %4239 = vmatprep.subr.bf16.mxu0 %v4480_v15 }
 0x103   : > { %4060 = vmatpush1.bf16.msra.mxu1 %v4059_v44 }
 0x104   : > { %1306 = vmatmul.mubr.f32.vlgmr.msra.gmra.mrb[0].mxu0 %v1217_v10  ;;  %4061 = vmatprep.subr.bf16.mxu1 %v4480_v15 }
 0x105   : > { %3343 = vmatprep.mubr.msk.f32.mxu0 %vm624_vm1, %v1224_v14 }
 0x107   : > { %4063 = vmatpush1.bf16.msra.mxu1 %v4062_v50 }
 0x108   : > { %1312 = vmatmul.mubr.f32.gmra.mrb[2].mxu0 %v1222_v12  ;;  %1488 = vmatprep.subr.mxu1 %v4481_v55 }
 0x109   : > { %3344 = vmatprep.mubr.msk.f32.mxu0 %vm624_vm1, %v1228_v16 }
 0x10b   : > { %3346 = vmatpush1.msk.msra.mxu1 %vm605_vm0, %v1431_v56 }
 0x10c   : > { %1318 = vmatmul.mubr.f32.gmra.mrb[4].mxu0 %v1226_v24 }
 0x10d   : > { %3345 = vmatprep.mubr.msk.f32.mxu0 %vm624_vm1, %v1227_v17 }
 0x110   : > { %1324 = vmatmul.mubr.f32.gmra.mrb[6].mxu0 %v1225_v13 }
 0x111   : > { %3691 = vmatprep.mubr.msk.f32.mxu0 %vm4484_vm14, %v4481_v55 }
 0x1d7   : > { %v1307_v58 = vpop.f32.mrb[0].mxu0 }
 0x1d8   : > { %v1350_v59 = vadd.f32 %v1343_v54, %v1307_v58  ;;  %v1309_v60 = vpop.f32.mrb[1].mxu0 }
 0x1d9   : > { %v1351_v62 = vadd.f32 %v1347_v57, %v1309_v60 }
 0x1da   : > { %v1358_v61 = vmax.f32 %v1350_v59, 0.0 }
 0x1db   : > { %v1313_v63 = vpop.f32.mrb[2].mxu0  ;;  %v1359_v1 = vmax.f32 %v1351_v62, 0.0 }
 0x1dc   : > { %v1352_v0 = vadd.f32 %v1343_v54, %v1313_v63  ;;  %1374 = vrot.lane.b32.xlu0 %v1358_v61, %s4482_s25  ;;  %v1315_v46 = vpop.f32.mrb[3].mxu0  ;;  %v3355_v63 = vld [vmem:[%s6414_s5 + $0xb8] sm:$0xff] }
 0x1dd   : > { %v1353_v3 = vadd.f32 %v1347_v57, %v1315_v46 }
 0x1de   : > { %v1360_v2 = vmax.f32 %v1352_v0, 0.0  ;;  %v3357_v0 = vld [vmem:[%s6414_s5 + $0xc8] sm:$0xff] }
 0x1df   : > { %v1319_v4 = vpop.f32.mrb[4].mxu0  ;;  %v1361_v7 = vmax.f32 %v1353_v3, 0.0  ;;  %v3354_v3 = vld [vmem:[%s6414_s5 + $0xb0] sm:$0xff] }
 0x1e0   : > { %v1354_v5 = vadd.f32 %v1343_v54, %v1319_v4  ;;  %1376 = vrot.lane.b32.xlu0 %v1359_v1, %s4482_s25  ;;  %1378 = vrot.lane.b32.xlu1 %v1360_v2, %s4482_s25  ;;  %v1321_v6 = vpop.f32.mrb[5].mxu0  ;;  %v3356_v4 = vld [vmem:[%s6414_s5 + $0xc0] sm:$0xff] }
 0x1e1   : > { %v1355_v10 = vadd.f32 %v1347_v57, %v1321_v6  ;;  %v3361_v6 = vld [vmem:[%s6414_s5 + $0xe8] sm:$0xff] }
 0x1e2   : > { %v1362_v9 = vmax.f32 %v1354_v5, 0.0  ;;  %v3359_v5 = vld [vmem:[%s6414_s5 + $0xd8] sm:$0xff] }
 0x1e3   : > { %v1325_v11 = vpop.f32.mrb[6].mxu0  ;;  %v1363_v12 = vmax.f32 %v1355_v10, 0.0  ;;  %v4078_v10 = vpack.c.bf16 %v3361_v6, %v3359_v5  ;;  %v1653_v5 = vld [vmem:[%s6414_s5 + $0x68] sm:$0xff]  ;;  %v1655_v6 = vld [vmem:[%s6414_s5 + $0x78] sm:$0xff] }
 0x1e4   : > { %v1356_v14 = vadd.f32 %v1343_v54, %v1325_v11  ;;  %1380 = vrot.lane.b32.xlu1 %v1361_v7, %s4482_s25  ;;  %1382 = vrot.lane.b32.xlu0 %v1362_v9, %s4482_s25  ;;  %v1327_v17 = vpop.f32.mrb[7].mxu0  ;;  %v3358_v11 = vld [vmem:[%s6414_s5 + $0xd0] sm:$0xff] }
 0x1e5   : > { %v1357_v16 = vadd.f32 %v1347_v57, %v1327_v17  ;;  %v3363_v17 = vld [vmem:[%s6414_s5 + $0xf8] sm:$0xff] }
 0x1e6   : > { %v1364_v13 = vmax.f32 %v1356_v14, 0.0  ;;  %v3360_v14 = vld [vmem:[%s6414_s5 + $0xe0] sm:$0xff] }
 0x1e7   : > { %v1365_v24 = vmax.f32 %v1357_v16, 0.0 }
 0x1e8   : > { %1384 = vrot.lane.b32.xlu1 %v1363_v12, %s4482_s25  ;;  %1386 = vrot.lane.b32.xlu0 %v1364_v13, %s4482_s25 }
 0x1ec   : > { %1388 = vrot.lane.b32.xlu1 %v1365_v24, %s4482_s25 }
 0x24e   : > { %v1375_v33 = vpop.permute.xlu0 %1374 }
 0x252   : > { %v1377_v27 = vpop.permute.xlu0 %1376  ;;  %v1379_v39 = vpop.permute.xlu1 %1378 }
 0x253   : > { %v1391_v18 = vsel %vm1390_vm5, %v1375_v33, %v1377_v27  ;;  %v1404_v19 = vmax.f32 %v1359_v1, %v1377_v27  ;;  %v3364_v33 = vld [vmem:[%s6414_s5 + $0x100] sm:$0xff]  ;;  %v3367_v27 = vld [vmem:[%s6414_s5 + $0x118] sm:$0xff] }
 0x254   : > { %v1403_v20 = vmax.f32 %v1358_v61, %v1391_v18 }
 0x255   : > { %3347 = vmatprep.mubr.msk.f32.mxu1 %vm1432_vm6, %v1404_v19 }
 0x256   : > { %1513 = vmatmul.mubr.f32.vlgmr.msra.gmra.mrb[0].mxu1 %v1403_v20  ;;  %v1381_v32 = vpop.permute.xlu1 %1380  ;;  %v1383_v25 = vpop.permute.xlu0 %1382  ;;  %v3366_v20 = vld [vmem:[%s6414_s5 + $0x110] sm:$0xff] }
 0x257   : > { %v1392_v21 = vsel %vm1390_vm5, %v1379_v39, %v1381_v32  ;;  %v1406_v22 = vmax.f32 %v1361_v7, %v1381_v32  ;;  %v1553_v7 = vld [vmem:[%s6413_s4 + $0x8] sm:$0x3f]  ;;  %v3368_v32 = vld [vmem:[%s6414_s5 + $0x120] sm:$0xff] }
 0x258   : > { %v1405_v23 = vmax.f32 %v1360_v2, %v1392_v21  ;;  %v4074_v2 = vpack.c.bf16 %v3357_v0, %v3355_v63  ;;  %v3369_v39 = vld [vmem:[%s6414_s5 + $0x128] sm:$0xff]  ;;  %v3371_v21 = vld [vmem:[%s6414_s5 + $0x138] sm:$0xff] }
 0x259   : > { %3348 = vmatprep.mubr.msk.f32.mxu1 %vm1432_vm6, %v1406_v22  ;;  %v4086_v19 = vpack.c.bf16 %v3369_v39, %v3367_v27  ;;  %v3373_v22 = vld [vmem:[%s6414_s5 + $0x148] sm:$0xff] }
 0x25a   : > { %1518 = vmatmul.mubr.f32.gmra.mrb[2].mxu1 %v1405_v23  ;;  %v1385_v26 = vpop.permute.xlu1 %1384  ;;  %v1387_v31 = vpop.permute.xlu0 %1386  ;;  %v4088_v23 = vpack.c.bf16 %v3368_v32, %v3366_v20  ;;  %v1661_v27 = vld [vmem:[%s6414_s5 + $0xa8] sm:$0xf]  ;;  %v3386_v20 = vld [vmem:[%s6414_s5 + $0x170] sm:$0xff] }
 0x25b   : > { %v1393_v28 = vsel %vm1390_vm5, %v1383_v25, %v1385_v26  ;;  %v1408_v29 = vmax.f32 %v1363_v12, %v1385_v26  ;;  %v3365_v12 = vld [vmem:[%s6414_s5 + $0x108] sm:$0xff]  ;;  %v4090_v25 = vpack.c.bf16 %v3373_v22, %v3371_v21  ;;  %v3370_v26 = vld [vmem:[%s6414_s5 + $0x130] sm:$0xff]  ;;  %v3391_v21 = vld [vmem:[%s6414_s5 + $0x198] sm:$0xff] }
 0x25c   : > { %v1407_v30 = vmax.f32 %v1362_v9, %v1393_v28  ;;  %v4076_v9 = vpack.c.bf16 %v3356_v4, %v3354_v3  ;;  %v4082_v16 = vpack.c.bf16 %v3365_v12, %v3363_v17  ;;  %v3372_v28 = vld [vmem:[%s6414_s5 + $0x140] sm:$0xff]  ;;  %v1650_v4 = vld [vmem:[%s6414_s5 + $0x50] sm:$0xff]  ;;  %v1659_v17 = vld [vmem:[%s6414_s5 + $0x98] sm:$0xff] }
 0x25d   : > { %3349 = vmatprep.mubr.msk.f32.mxu1 %vm1432_vm6, %v1408_v29  ;;  %v4092_v29 = vpack.c.bf16 %v3372_v28, %v3370_v26  ;;  %v1648_v3 = vld [vmem:[%s6414_s5 + $0x40] sm:$0xff]  ;;  %v3385_v39 = vld [vmem:[%s6414_s5 + $0x168] sm:$0xff] }
 0x25e   : > { %1523 = vmatmul.mubr.f32.gmra.mrb[4].mxu1 %v1407_v30  ;;  %v1389_v8 = vpop.permute.xlu1 %1388  ;;  %v3375_v30 = vld [vmem:[%s6414_s5 + $0x158] sm:$0xf]  ;;  %v3389_v32 = vld [vmem:[%s6414_s5 + $0x188] sm:$0xff]  ;;  %v1660_v22 = vld [vmem:[%s6414_s5 + $0xa0] sm:$0xf] }
 0x25f   : > { %v1394_v34 = vsel %vm1390_vm5, %v1387_v31, %v1389_v8  ;;  %v1410_v35 = vmax.f32 %v1365_v24, %v1389_v8  ;;  %v3362_v24 = vld [vmem:[%s6414_s5 + $0xf0] sm:$0xff]  ;;  %v1641_v31 = vld [vmem:[%s6414_s5 + $0x8] sm:$0xff]  ;;  %v1643_v8 = vld [vmem:[%s6414_s5 + $0x18] sm:$0xff]  ;;  %v4118_v26 = vpack.c.bf16 %v3391_v21, %v3389_v32 }
 0x260   : > { %v1409_v36 = vmax.f32 %v1364_v13, %v1394_v34  ;;  %v4080_v13 = vpack.c.bf16 %v3360_v14, %v3358_v11  ;;  %v4084_v18 = vpack.c.bf16 %v3364_v33, %v3362_v24  ;;  %v3374_v34 = vld [vmem:[%s6414_s5 + $0x150] sm:$0xf]  ;;  %v1657_v14 = vld [vmem:[%s6414_s5 + $0x88] sm:$0xff]  ;;  %v3388_v28 = vld [vmem:[%s6414_s5 + $0x180] sm:$0xff] }
 0x261   : > { %3350 = vmatprep.mubr.msk.f32.mxu1 %vm1432_vm6, %v1410_v35  ;;  %v4094_v35 = vpack.c.bf16 %v1643_v8, %v1641_v31  ;;  %v1654_v11 = vld [vmem:[%s6414_s5 + $0x70] sm:$0xff]  ;;  %v3395_v31 = vld [vmem:[%s6414_s5 + $0x1b8] sm:$0xff] }
 0x262   : > { %1528 = vmatmul.mubr.f32.gmra.mrb[6].mxu1 %v1409_v36  ;;  %v1640_v36 = vld [vmem:[%s6414_s5] sm:$0xff]  ;;  %v1658_v24 = vld [vmem:[%s6414_s5 + $0x90] sm:$0xff] }
 0x263   : > { %3615 = vmatprep.mubr.msk.f32.mxu1 %vm1554_vm7, %v1552_v37  ;;  %v1642_v37 = vld [vmem:[%s6414_s5 + $0x10] sm:$0xff] }
 0x329   : > { %v1514_v40 = vpop.f32.mrb[0].mxu1 }
 0x32a   : > { %v1516_v41 = vpop.f32.mrb[1].mxu1  ;;  %v1537_v43 = vrot.slane %v1514_v40, 1 }
 0x32b   : > { %v4096_v41 = vpack.c.bf16 %v1642_v37, %v1640_v36  ;;  %v3394_v36 = vld [vmem:[%s6414_s5 + $0x1b0] sm:$0xff]  ;;  %v3397_v37 = vld [vmem:[%s6414_s5 + $0x1c8] sm:$0xff] }
 0x32d   : > { %v1519_v42 = vpop.f32.mrb[2].mxu1 }
 0x32e   : > { %v1538_v38 = vrot.slane %v1519_v42, 1  ;;  %v1521_v44 = vpop.f32.mrb[3].mxu1 }
 0x330   : > { %v1539_v45 = vsel %vm605_vm0, %v1537_v43, %v1538_v38  ;;  %v1647_v43 = vld [vmem:[%s6414_s5 + $0x38] sm:$0xff] }
 0x331   : > { %v1524_v48 = vpop.f32.mrb[4].mxu1  ;;  %v1548_v49 = vmax.f32 %v1514_v40, %v1539_v45 }
 0x332   : > { %v1540_v50 = vrot.slane %v1524_v48, 1  ;;  %v1526_v52 = vpop.f32.mrb[5].mxu1 }
 0x334   : > { %v1541_v54 = vsel %vm605_vm0, %v1538_v38, %v1540_v50 }
 0x335   : > { %v1529_v56 = vpop.f32.mrb[6].mxu1  ;;  %v1549_v57 = vmax.f32 %v1519_v42, %v1541_v54  ;;  %v1645_v42 = vld [vmem:[%s6414_s5 + $0x28] sm:$0xff] }
 0x336   : > { %v1542_v58 = vrot.slane %v1529_v56, 1  ;;  %v1531_v59 = vpop.f32.mrb[7].mxu1 }
 0x337   : > { %v4064_v60 = vpack.c.bf16 %v1549_v57, %v1548_v49  ;;  %v4098_v57 = vpack.c.bf16 %v1647_v43, %v1645_v42  ;;  %v1646_v59 = vld [vmem:[%s6414_s5 + $0x30] sm:$0xff] }
 0x338   : > { %v1543_v61 = vsel %vm605_vm0, %v1540_v50, %v1542_v58  ;;  %v1551_v62 = vmax.f32 %v1529_v56, %v1542_v58  ;;  %v1644_v58 = vld [vmem:[%s6414_s5 + $0x20] sm:$0xff] }
 0x339   : > { %v1550_v46 = vmax.f32 %v1524_v48, %v1543_v61  ;;  %4065 = vmatprep.subr.bf16.mxu1 %v4064_v60  ;;  %v1649_v61 = vld [vmem:[%s6414_s5 + $0x48] sm:$0xff] }
 0x33a   : > { %4067 = vmatpush3.bf16.msra.mxu1 %v4064_v60 }
 0x33b   : > { %v4068_v1 = vpack.c.bf16 %v1551_v62, %v1550_v46  ;;  %v1651_v62 = vld [vmem:[%s6414_s5 + $0x58] sm:$0xff] }
 0x33d   : > { %4070 = vmatprep.subr.msk.bf16.mxu1 %vm4069_vm10, %v4068_v1 }
 0x33e   : > { %4073 = vmatpush3.bf16.msk.msra.mxu1 %vm4069_vm10, %v4068_v1  ;;  %v4100_v1 = vpack.c.bf16 %v1646_v59, %v1644_v58  ;;  %v3402_v58 = vld [vmem:[%s6414_s5 + $0x1f0] sm:$0xff] }
 0x33f   : > { %4075 = vmatprep.subr.bf16.mxu1 %v4074_v2  ;;  %v4102_v2 = vpack.c.bf16 %v1651_v62, %v1649_v61  ;;  %v3411_v61 = vld [vmem:[%s6414_s5 + $0x218] sm:$0xff]  ;;  %v3413_v62 = vld [vmem:[%s6414_s5 + $0x228] sm:$0xff] }
 0x341   : > { %3616 = vmatmul.mubr.msk.f32.vlgmr.msra.gmra.mrb[8].mxu1 %vm1554_vm7, %v1553_v7  ;;  %v4104_v7 = vpack.c.bf16 %v1650_v4, %v1648_v3  ;;  %v3415_v3 = vld [vmem:[%s6414_s5 + $0x238] sm:$0xff]  ;;  %v3417_v4 = vld [vmem:[%s6414_s5 + $0x248] sm:$0xff] }
 0x342   : > { %4077 = vmatpush1.bf16.msra.mxu1 %v4076_v9  ;;  %1765 = vmatprep.mubr.f32.mxu1 %v4481_v55  ;;  %v4106_v9 = vpack.c.bf16 %v1655_v6, %v1653_v5  ;;  %v3404_v5 = vld [vmem:[%s6414_s5 + $0x200] sm:$0xf]  ;;  %v4134_v6 = vpack.c.bf16 %v3413_v62, %v3411_v61  ;;  %v3450_v61 = vld [vmem:[%s6414_s5 + $0x330] sm:$0xff]  ;;  %v3453_v62 = vld [vmem:[%s6414_s5 + $0x348] sm:$0xff] }
 0x343   : > { %4079 = vmatprep.subr.bf16.mxu1 %v4078_v10  ;;  %v1652_v10 = vld [vmem:[%s6414_s5 + $0x60] sm:$0xff] }
 0x344   : > { %v4108_v12 = vpack.c.bf16 %v1654_v11, %v1652_v10  ;;  %v3414_v10 = vld [vmem:[%s6414_s5 + $0x230] sm:$0xff]  ;;  %v3416_v11 = vld [vmem:[%s6414_s5 + $0x240] sm:$0xff] }
 0x346   : > { %4081 = vmatpush1.bf16.msra.mxu1 %v4080_v13  ;;  %v4110_v13 = vpack.c.bf16 %v1659_v17, %v1657_v14  ;;  %v3419_v14 = vld [vmem:[%s6414_s5 + $0x258] sm:$0xff]  ;;  %v3421_v17 = vld [vmem:[%s6414_s5 + $0x268] sm:$0xff] }
 0x347   : > { %4083 = vmatprep.subr.bf16.mxu1 %v4082_v16  ;;  %v1656_v16 = vld [vmem:[%s6414_s5 + $0x80] sm:$0xff] }
 0x348   : > { %v4112_v33 = vpack.c.bf16 %v1658_v24, %v1656_v16  ;;  %v3418_v16 = vld [vmem:[%s6414_s5 + $0x250] sm:$0xff]  ;;  %v3420_v24 = vld [vmem:[%s6414_s5 + $0x260] sm:$0xff] }
 0x34a   : > { %4085 = vmatpush1.bf16.msra.mxu1 %v4084_v18  ;;  %v3387_v18 = vld [vmem:[%s6414_s5 + $0x178] sm:$0xff] }
 0x34b   : > { %4087 = vmatprep.subr.bf16.mxu1 %v4086_v19  ;;  %v3384_v19 = vld [vmem:[%s6414_s5 + $0x160] sm:$0xff] }
 0x34e   : > { %4089 = vmatpush1.bf16.msra.mxu1 %v4088_v23  ;;  %v4114_v23 = vpack.c.bf16 %v3387_v18, %v3385_v39  ;;  %v3422_v18 = vld [vmem:[%s6414_s5 + $0x270] sm:$0xff] }
 0x34f   : > { %4091 = vmatprep.subr.bf16.mxu1 %v4090_v25  ;;  %v4116_v25 = vpack.c.bf16 %v3386_v20, %v3384_v19  ;;  %v3424_v19 = vld [vmem:[%s6414_s5 + $0x280] sm:$0xff]  ;;  %v3427_v20 = vld [vmem:[%s6414_s5 + $0x298] sm:$0xff] }
 0x350   : > { %v4148_v32 = vpack.c.bf16 %v3424_v19, %v3422_v18  ;;  %v2269_v18 = vld [vmem:[%s6416_s7 + $0x58] sm:$0xff] }
 0x352   : > { %4093 = vmatpush1.bf16.msra.mxu1 %v4092_v29  ;;  %v3390_v29 = vld [vmem:[%s6414_s5 + $0x190] sm:$0xff] }
 0x353   : > { %3376 = vmatprep.subr.msk.mxu1 %vm1214_vm4, %v3375_v30  ;;  %v3393_v30 = vld [vmem:[%s6414_s5 + $0x1a8] sm:$0xff]  ;;  %v4120_v8 = vpack.c.bf16 %v3390_v29, %v3388_v28  ;;  %v3439_v29 = vld [vmem:[%s6414_s5 + $0x2d8] sm:$0xff] }
 0x354   : > { %v3437_v28 = vld [vmem:[%s6414_s5 + $0x2c8] sm:$0xff] }
 0x356   : > { %3377 = vmatpush1.msk.msra.mxu1 %vm1214_vm4, %v3374_v34  ;;  %v4122_v34 = vpack.c.bf16 %v3395_v31, %v3393_v30  ;;  %v3436_v30 = vld [vmem:[%s6414_s5 + $0x2c0] sm:$0xff]  ;;  %v3438_v31 = vld [vmem:[%s6414_s5 + $0x2d0] sm:$0xff] }
 0x357   : > { %4095 = vmatprep.subr.bf16.mxu1 %v4094_v35  ;;  %v3392_v35 = vld [vmem:[%s6414_s5 + $0x1a0] sm:$0xff] }
 0x358   : > { %v4124_v42 = vpack.c.bf16 %v3394_v36, %v3392_v35  ;;  %v3430_v35 = vld [vmem:[%s6414_s5 + $0x2b0] sm:$0xf]  ;;  %v4154_v36 = vpack.c.bf16 %v3439_v29, %v3437_v28 }
 0x359   : > { %v2276_v29 = vld [vmem:[%s6416_s7 + $0x90] sm:$0xff] }
 0x414   : > { %v5661_v40 = vpop.f32.mrb[8].mxu1 }
 0x415   : > { %v1688_v38 = vrot.slane %v5661_v40, 1  ;;  %v1889_v44 = vrot.slane %v5661_v40, 2  ;;  %v2006_v45 = vrot.slane %v5661_v40, 3  ;;  %v2123_v48 = vrot.slane %v5661_v40, 4  ;;  %v1631_v49 = vpop.f32.mrb[9].mxu1 }
 0x416   : > { %v1687_v50 = vrot.slane %v1631_v49, 1  ;;  %v1888_v52 = vrot.slane %v1631_v49, 2  ;;  %v2005_v54 = vrot.slane %v1631_v49, 3  ;;  %v2122_v56 = vrot.slane %v1631_v49, 4 }
 0x418   : > { %v1689_v60 = vsel %vm605_vm0, %v1687_v50, %v1688_v38  ;;  %v5689_v63 = vsel %vm868_vm2, %v1888_v52, %v1889_v44  ;;  %v5694_v0 = vsel %vm1041_vm3, %v2005_v54, %v2006_v45  ;;  %v5699_v46 = vsel %vm1214_vm4, %v2122_v56, %v2123_v48  ;;  %v3401_v50 = vld [vmem:[%s6414_s5 + $0x1e8] sm:$0xff]  ;;  %v3403_v52 = vld [vmem:[%s6414_s5 + $0x1f8] sm:$0xff]  ;;  %vm4207_vm2 = vmpackc.low %vm2377_vm15, %vm4483_vm9 }
 0x419   : > { %3378 = vmatmul.mubr.msk.f32.vlgmr.msra.gmra.mrb[10].mxu1 %vm1690_vm11, %v1689_v60  ;;  %v4130_v56 = vpack.c.bf16 %v3403_v52, %v3401_v50  ;;  %v3405_v60 = vld [vmem:[%s6414_s5 + $0x208] sm:$0xf]  ;;  %vm2373_vm3 = vcmask 72704  }
 0x41a   : > { %4097 = vmatpush1.bf16.msra.mxu1 %v4096_v41  ;;  %1771 = vmatprep.mubr.f32.mxu1 %v4481_v55  ;;  %v3399_v41 = vld [vmem:[%s6414_s5 + $0x1d8] sm:$0xff] }
 0x41b   : > { %4099 = vmatprep.subr.bf16.mxu1 %v4098_v57  ;;  %v4126_v43 = vpack.c.bf16 %v3399_v41, %v3397_v37  ;;  %v3400_v57 = vld [vmem:[%s6414_s5 + $0x1e0] sm:$0xff]  ;;  %v4156_v37 = vpack.c.bf16 %v3438_v31, %v3436_v30  ;;  %v2277_v30 = vld [vmem:[%s6416_s7 + $0x98] sm:$0x7f] }
 0x41c   : > { %v4132_v59 = vpack.c.bf16 %v3402_v58, %v3400_v57  ;;  %v3449_v57 = vld [vmem:[%s6414_s5 + $0x328] sm:$0xff]  ;;  %v4202_v31 = vpack.c.bf16 %v2277_v30, %v2276_v29  ;;  %v3473_v30 = vld [vmem:[%s6418_s9 + $0x80] sm:$0xff] }
 0x41d   : > { %3379 = vmatmul.mubr.msk.f32.gmra.mrb[12].mxu1 %vm1690_vm11, %v1688_v38  ;;  %v3396_v38 = vld [vmem:[%s6414_s5 + $0x1c0] sm:$0xff] }
 0x41e   : > { %4101 = vmatpush1.bf16.msra.mxu1 %v4100_v1  ;;  %1852 = vmatprep.mubr.f32.mxu1 %v4481_v55  ;;  %v3410_v1 = vld [vmem:[%s6414_s5 + $0x210] sm:$0xff] }
 0x41f   : > { %4103 = vmatprep.subr.bf16.mxu1 %v4102_v2  ;;  %v3412_v2 = vld [vmem:[%s6414_s5 + $0x220] sm:$0xff] }
 0x422   : > { %4105 = vmatpush1.bf16.msra.mxu1 %v4104_v7  ;;  %v4136_v7 = vpack.c.bf16 %v3412_v2, %v3410_v1 }
 0x423   : > { %4107 = vmatprep.subr.bf16.mxu1 %v4106_v9  ;;  %v4138_v9 = vpack.c.bf16 %v3417_v4, %v3415_v3  ;;  %v3452_v3 = vld [vmem:[%s6414_s5 + $0x340] sm:$0xff]  ;;  %v3454_v4 = vld [vmem:[%s6414_s5 + $0x350] sm:$0xff] }
 0x426   : > { %4109 = vmatpush1.bf16.msra.mxu1 %v4108_v12  ;;  %v4140_v12 = vpack.c.bf16 %v3416_v11, %v3414_v10  ;;  %v2259_v10 = vld [vmem:[%s6416_s7 + $0x8] sm:$0xff] }
 0x427   : > { %4111 = vmatprep.subr.bf16.mxu1 %v4110_v13  ;;  %v4142_v13 = vpack.c.bf16 %v3421_v17, %v3419_v14  ;;  %v2261_v14 = vld [vmem:[%s6416_s7 + $0x18] sm:$0xff]  ;;  %v2263_v17 = vld [vmem:[%s6416_s7 + $0x28] sm:$0xff] }
 0x42a   : > { %4113 = vmatpush1.bf16.msra.mxu1 %v4112_v33  ;;  %v3423_v33 = vld [vmem:[%s6414_s5 + $0x278] sm:$0xff] }
 0x42b   : > { %3380 = vmatprep.subr.msk.mxu1 %vm1214_vm4, %v1661_v27  ;;  %v4144_v27 = vpack.c.bf16 %v3420_v24, %v3418_v16  ;;  %v2265_v16 = vld [vmem:[%s6416_s7 + $0x38] sm:$0xff] }
 0x42e   : > { %3381 = vmatpush1.msk.msra.mxu1 %vm1214_vm4, %v1660_v22  ;;  %v3426_v22 = vld [vmem:[%s6414_s5 + $0x290] sm:$0xff] }
 0x42f   : > { %3382 = vmatmul.mubr.msk.f32.vlgmr.msra.gmra.mrb[10].mxu1 %vm1690_vm11, %v1631_v49  ;;  %4115 = vmatprep.subr.bf16.mxu1 %v4114_v23  ;;  %v3398_v49 = vld [vmem:[%s6414_s5 + $0x1d0] sm:$0xff]  ;;  %v3428_v23 = vld [vmem:[%s6414_s5 + $0x2a0] sm:$0xff] }
 0x430   : > { %4117 = vmatpush1.bf16.msra.mxu1 %v4116_v25  ;;  %1858 = vmatprep.mubr.f32.mxu1 %v4481_v55  ;;  %v4128_v54 = vpack.c.bf16 %v3398_v49, %v3396_v38  ;;  %v4152_v25 = vpack.c.bf16 %v3428_v23, %v3426_v22  ;;  %v3445_v38 = vld [vmem:[%s6414_s5 + $0x308] sm:$0xff]  ;;  %v3447_v49 = vld [vmem:[%s6414_s5 + $0x318] sm:$0xff] }
 0x431   : > { %4119 = vmatprep.subr.bf16.mxu1 %v4118_v26  ;;  %v3431_v26 = vld [vmem:[%s6414_s5 + $0x2b8] sm:$0xf]  ;;  %v4162_v52 = vpack.c.bf16 %v3447_v49, %v3445_v38 }
 0x432   : > { %v2273_v22 = vld [vmem:[%s6416_s7 + $0x78] sm:$0xff] }
 0x433   : > { %3383 = vmatmul.mubr.msk.f32.gmra.mrb[12].mxu1 %vm1690_vm11, %v5661_v40 }
 0x434   : > { %4121 = vmatpush1.bf16.msra.mxu1 %v4120_v8  ;;  %1965 = vmatprep.mubr.f32.mxu1 %v4481_v55  ;;  %v3441_v8 = vld [vmem:[%s6414_s5 + $0x2e8] sm:$0xff] }
 0x435   : > { %4123 = vmatprep.subr.bf16.mxu1 %v4122_v34  ;;  %v3443_v34 = vld [vmem:[%s6414_s5 + $0x2f8] sm:$0xff] }
 0x436   : > { %v4158_v41 = vpack.c.bf16 %v3443_v34, %v3441_v8  ;;  %v2216_v8 = vld [vmem:[%s6415_s6] sm:$0x3] }
 0x437   : > { %v2221_v34 = vrot.slane %v2216_v8, %v1342_v51 }
 0x438   : > { %4125 = vmatpush1.bf16.msra.mxu1 %v4124_v42  ;;  %v3440_v42 = vld [vmem:[%s6414_s5 + $0x2e0] sm:$0xff] }
 0x439   : > { %4127 = vmatprep.subr.bf16.mxu1 %v4126_v43  ;;  %v3442_v43 = vld [vmem:[%s6414_s5 + $0x2f0] sm:$0xff] }
 0x43a   : > { %v4160_v50 = vpack.c.bf16 %v3442_v43, %v3440_v42 }
 0x43c   : > { %4129 = vmatpush1.bf16.msra.mxu1 %v4128_v54  ;;  %v3444_v54 = vld [vmem:[%s6414_s5 + $0x300] sm:$0xff] }
 0x43d   : > { %4131 = vmatprep.subr.bf16.mxu1 %v4130_v56  ;;  %v3446_v56 = vld [vmem:[%s6414_s5 + $0x310] sm:$0xff] }
 0x43e   : > { %v4164_v58 = vpack.c.bf16 %v3446_v56, %v3444_v54 }
 0x440   : > { %4133 = vmatpush1.bf16.msra.mxu1 %v4132_v59 }
 0x441   : > { %3406 = vmatprep.subr.msk.mxu1 %vm1214_vm4, %v3405_v60  ;;  %v3448_v60 = vld [vmem:[%s6414_s5 + $0x320] sm:$0xff] }
 0x442   : > { %v4168_v1 = vpack.c.bf16 %v3450_v61, %v3448_v60 }
 0x444   : > { %3407 = vmatpush1.msk.msra.mxu1 %vm1214_vm4, %v3404_v5  ;;  %v4172_v5 = vpack.c.bf16 %v3454_v4, %v3452_v3  ;;  %v3481_v4 = vld [vmem:[%s6418_s9 + $0xb0] sm:$0xff] }
 0x445   : > { %3408 = vmatmul.mubr.msk.f32.vlgmr.msra.gmra.mrb[10].mxu1 %vm1690_vm11, %v5689_v63  ;;  %4135 = vmatprep.subr.bf16.mxu1 %v4134_v6  ;;  %v3425_v63 = vld [vmem:[%s6414_s5 + $0x288] sm:$0xff] }
 0x446   : > { %4137 = vmatpush1.bf16.msra.mxu1 %v4136_v7  ;;  %1971 = vmatprep.mubr.f32.mxu1 %v4481_v55  ;;  %v4146_v39 = vpack.c.bf16 %v3425_v63, %v3423_v33  ;;  %v3457_v6 = vld [vmem:[%s6414_s5 + $0x368] sm:$0xf]  ;;  %v3456_v7 = vld [vmem:[%s6414_s5 + $0x360] sm:$0xf] }
 0x447   : > { %4139 = vmatprep.subr.bf16.mxu1 %v4138_v9  ;;  %v2258_v9 = vld [vmem:[%s6416_s7] sm:$0xff]  ;;  %v2267_v63 = vld [vmem:[%s6416_s7 + $0x48] sm:$0xff] }
 0x448   : > { %v4175_v11 = vpack.c.bf16 %v2259_v10, %v2258_v9  ;;  %v2266_v33 = vld [vmem:[%s6416_s7 + $0x40] sm:$0xff]  ;;  %v3484_v9 = vld [vmem:[%s6418_s9 + $0xc8] sm:$0xff] }
 0x449   : > { %3409 = vmatmul.mubr.msk.f32.gmra.mrb[12].mxu1 %vm1690_vm11, %v1889_v44  ;;  %v3429_v44 = vld [vmem:[%s6414_s5 + $0x2a8] sm:$0xff] }
 0x44a   : > { %4141 = vmatpush1.bf16.msra.mxu1 %v4140_v12  ;;  %2082 = vmatprep.mubr.f32.mxu1 %v4481_v55  ;;  %v4150_v21 = vpack.c.bf16 %v3429_v44, %v3427_v20  ;;  %v2270_v20 = vld [vmem:[%s6416_s7 + $0x60] sm:$0xff]  ;;  %v2271_v44 = vld [vmem:[%s6416_s7 + $0x68] sm:$0xff] }
 0x44b   : > { %4143 = vmatprep.subr.bf16.mxu1 %v4142_v13  ;;  %v2264_v13 = vld [vmem:[%s6416_s7 + $0x30] sm:$0xff] }
 0x44c   : > { %v4184_v24 = vpack.c.bf16 %v2265_v16, %v2264_v13 }
 0x44e   : > { %4145 = vmatpush1.bf16.msra.mxu1 %v4144_v27  ;;  %v4187_v27 = vpack.c.bf16 %v2267_v63, %v2266_v33 }
 0x44f   : > { %4147 = vmatprep.subr.bf16.mxu1 %v4146_v39  ;;  %v2268_v39 = vld [vmem:[%s6416_s7 + $0x50] sm:$0xff] }
 0x450   : > { %v4190_v19 = vpack.c.bf16 %v2269_v18, %v2268_v39 }
 0x452   : > { %4149 = vmatpush1.bf16.msra.mxu1 %v4148_v32  ;;  %v4193_v32 = vpack.c.bf16 %v2271_v44, %v2270_v20  ;;  %v3468_v20 = vld [vmem:[%s6418_s9 + $0x58] sm:$0xff] }
 0x453   : > { %4151 = vmatprep.subr.bf16.mxu1 %v4150_v21  ;;  %v2272_v21 = vld [vmem:[%s6416_s7 + $0x70] sm:$0xff] }
 0x454   : > { %v4196_v23 = vpack.c.bf16 %v2273_v22, %v2272_v21  ;;  %v3469_v22 = vld [vmem:[%s6418_s9 + $0x60] sm:$0xff] }
 0x456   : > { %4153 = vmatpush1.bf16.msra.mxu1 %v4152_v25  ;;  %v2274_v25 = vld [vmem:[%s6416_s7 + $0x80] sm:$0xff] }
 0x457   : > { %3432 = vmatprep.subr.msk.mxu1 %vm1214_vm4, %v3431_v26  ;;  %v2275_v26 = vld [vmem:[%s6416_s7 + $0x88] sm:$0xff] }
 0x458   : > { %v4199_v28 = vpack.c.bf16 %v2275_v26, %v2274_v25  ;;  %v3471_v26 = vld [vmem:[%s6418_s9 + $0x70] sm:$0xff] }
 0x45a   : > { %3433 = vmatpush1.msk.msra.mxu1 %vm1214_vm4, %v3430_v35  ;;  %v2225_v35 = vrot.slane %v2216_v8, %v1346_v53 }
 0x45b   : > { %3434 = vmatmul.mubr.msk.f32.vlgmr.msra.gmra.mrb[10].mxu1 %vm1690_vm11, %v5694_v0  ;;  %4155 = vmatprep.subr.bf16.mxu1 %v4154_v36  ;;  %v3451_v0 = vld [vmem:[%s6414_s5 + $0x338] sm:$0xff] }
 0x45c   : > { %4157 = vmatpush1.bf16.msra.mxu1 %v4156_v37  ;;  %2088 = vmatprep.mubr.f32.mxu1 %v4481_v55  ;;  %v4166_v59 = vpack.c.bf16 %v3451_v0, %v3449_v57 }
 0x45d   : > { %4159 = vmatprep.subr.bf16.mxu1 %v4158_v41 }
 0x45f   : > { %3435 = vmatmul.mubr.msk.f32.gmra.mrb[12].mxu1 %vm1690_vm11, %v2006_v45  ;;  %v3455_v45 = vld [vmem:[%s6414_s5 + $0x358] sm:$0xff] }
 0x460   : > { %4161 = vmatpush1.bf16.msra.mxu1 %v4160_v50  ;;  %2199 = vmatprep.mubr.f32.mxu1 %v4481_v55  ;;  %v4170_v2 = vpack.c.bf16 %v3455_v45, %v3453_v62 }
 0x461   : > { %4163 = vmatprep.subr.bf16.mxu1 %v4162_v52 }
 0x464   : > { %4165 = vmatpush1.bf16.msra.mxu1 %v4164_v58 }
 0x465   : > { %4167 = vmatprep.subr.bf16.mxu1 %v4166_v59 }
 0x468   : > { %4169 = vmatpush1.bf16.msra.mxu1 %v4168_v1  ;;  %v3479_v1 = vld [vmem:[%s6418_s9 + $0xa0] sm:$0xff] }
 0x469   : > { %4171 = vmatprep.subr.bf16.mxu1 %v4170_v2  ;;  %v3480_v2 = vld [vmem:[%s6418_s9 + $0xa8] sm:$0xff] }
 0x46a   : > { %v4240_v3 = vpack.c.bf16 %v3480_v2, %v3479_v1  ;;  %v2457_v2 = vld [vmem:[%s6418_s9 + $0x30] sm:$0xff] }
 0x46c   : > { %4173 = vmatpush1.bf16.msra.mxu1 %v4172_v5  ;;  %4241 = vmatpush3.bf16.msra.mxu0 %v4240_v3  ;;  %v3482_v5 = vld [vmem:[%s6418_s9 + $0xb8] sm:$0xff] }
 0x46d   : > { %3458 = vmatprep.subr.msk.mxu1 %vm1214_vm4, %v3457_v6  ;;  %4242 = vmatprep.subr.bf16.mxu0 %v4480_v15  ;;  %v4243_v6 = vpack.c.bf16 %v3482_v5, %v3481_v4  ;;  %v2458_v3 = vld [vmem:[%s6418_s9 + $0x38] sm:$0xff]  ;;  %v3507_v4 = vld [vmem:[%s6418_s9 + $0x170] sm:$0xff] }
 0x46e   : > { %v3508_v5 = vld [vmem:[%s6418_s9 + $0x178] sm:$0xff] }
 0x470   : > { %3459 = vmatpush1.msk.msra.mxu1 %vm1214_vm4, %v3456_v7  ;;  %4244 = vmatpush3.bf16.msra.mxu0 %v4243_v6  ;;  %v3483_v7 = vld [vmem:[%s6418_s9 + $0xc0] sm:$0xff]  ;;  %v4234_v6 = vpack.c.bf16 %v2458_v3, %v2457_v2  ;;  %vm3047_vm4 = vcmask 57344  }
 0x471   : > { %3460 = vmatmul.mubr.msk.f32.vlgmr.msra.gmra.mrb[10].mxu1 %vm1690_vm11, %v5699_v46  ;;  %4174 = vmatprep.subr.bf16.mxu1 %v4480_v15  ;;  %v2260_v46 = vld [vmem:[%s6416_s7 + $0x10] sm:$0xff]  ;;  %v4246_v10 = vpack.c.bf16 %v3484_v9, %v3483_v7  ;;  %v4279_v7 = vpack.c.bf16 %v3508_v5, %v3507_v4  ;;  %v2459_v9 = vld [vmem:[%s6418_s9 + $0x40] sm:$0xff] }
 0x472   : > { %2205 = vmatprep.mubr.f32.mxu1 %v4481_v55  ;;  %4176 = vmatpush1.bf16.msra.mxu1 %v4175_v11  ;;  %v4178_v40 = vpack.c.bf16 %v2261_v14, %v2260_v46  ;;  %v3485_v46 = vld [vmem:[%s6418_s9 + $0xd0] sm:$0xff]  ;;  %v3486_v11 = vld [vmem:[%s6418_s9 + $0xd8] sm:$0xff] }
 0x473   : > { %4177 = vmatprep.subr.bf16.mxu1 %v4480_v15  ;;  %4245 = vmatprep.subr.bf16.mxu0 %v4480_v15  ;;  %v4249_v14 = vpack.c.bf16 %v3486_v11, %v3485_v46  ;;  %v3509_v46 = vld [vmem:[%s6418_s9 + $0x180] sm:$0xff]  ;;  %v3510_v11 = vld [vmem:[%s6418_s9 + $0x188] sm:$0xff] }
 0x474   : > { %4247 = vmatpush3.bf16.msra.mxu0 %v4246_v10  ;;  %v2460_v10 = vld [vmem:[%s6418_s9 + $0x48] sm:$0xff] }
 0x475   : > { %3461 = vmatmul.mubr.msk.f32.gmra.mrb[12].mxu1 %vm1690_vm11, %v2123_v48  ;;  %v2262_v48 = vld [vmem:[%s6416_s7 + $0x20] sm:$0xff]  ;;  %4248 = vmatprep.subr.bf16.mxu0 %v4480_v15 }
 0x476   : > { %4179 = vmatpush1.bf16.msra.mxu1 %v4178_v40  ;;  %v4181_v12 = vpack.c.bf16 %v2263_v17, %v2262_v48  ;;  %v3487_v40 = vld [vmem:[%s6418_s9 + $0xe0] sm:$0xff]  ;;  %v3488_v48 = vld [vmem:[%s6418_s9 + $0xe8] sm:$0xff] }
 0x477   : > { %4180 = vmatprep.subr.bf16.mxu1 %v4480_v15  ;;  %v4252_v17 = vpack.c.bf16 %v3488_v48, %v3487_v40  ;;  %v4282_v40 = vpack.c.bf16 %v3510_v11, %v3509_v46  ;;  %v3490_v48 = vld [vmem:[%s6418_s9 + $0xf0] sm:$0xff] }
 0x478   : > { %4250 = vmatpush3.bf16.msra.mxu0 %v4249_v14  ;;  %v4237_v14 = vpack.c.bf16 %v2460_v10, %v2459_v9 }
 0x479   : > { %4251 = vmatprep.subr.bf16.mxu0 %v4480_v15 }
 0x47a   : > { %4182 = vmatpush1.bf16.msra.mxu1 %v4181_v12 }
 0x47b   : > { %4183 = vmatprep.subr.bf16.mxu1 %v4480_v15 }
 0x47c   : > { %4253 = vmatpush3.bf16.msra.mxu0 %v4252_v17  ;;  %v3491_v17 = vld [vmem:[%s6418_s9 + $0xf8] sm:$0xff] }
 0x47d   : > { %4269 = vmatprep.subr.bf16.mxu0 %v4480_v15 }
 0x47e   : > { %4185 = vmatpush1.bf16.msra.mxu1 %v4184_v24 }
 0x47f   : > { %4186 = vmatprep.subr.bf16.mxu1 %v4480_v15 }
 0x482   : > { %4188 = vmatpush1.bf16.msra.mxu1 %v4187_v27 }
 0x483   : > { %4189 = vmatprep.subr.bf16.mxu1 %v4480_v15 }
 0x486   : > { %4191 = vmatpush1.bf16.msra.mxu1 %v4190_v19  ;;  %v3467_v19 = vld [vmem:[%s6418_s9 + $0x50] sm:$0xff] }
 0x487   : > { %4192 = vmatprep.subr.bf16.mxu1 %v4480_v15  ;;  %v4210_v21 = vpack.c.bf16 %v3468_v20, %v3467_v19  ;;  %v3497_v19 = vld [vmem:[%s6418_s9 + $0x128] sm:$0xff] }
 0x48a   : > { %4194 = vmatpush1.bf16.msra.mxu1 %v4193_v32  ;;  %v2372_v32 = vld [vmem:[%s6417_s8] sm:$0x1f] }
 0x48b   : > { %4195 = vmatprep.subr.bf16.mxu1 %v4480_v15 }
 0x48e   : > { %4197 = vmatpush1.bf16.msra.mxu1 %v4196_v23  ;;  %v3470_v23 = vld [vmem:[%s6418_s9 + $0x68] sm:$0xff] }
 0x48f   : > { %4198 = vmatprep.subr.bf16.mxu1 %v4480_v15  ;;  %v4213_v25 = vpack.c.bf16 %v3470_v23, %v3469_v22  ;;  %v2877_v23 = vld [vmem:[%s6420_s11] sm:$0xff] }
 0x492   : > { %4200 = vmatpush1.bf16.msra.mxu1 %v4199_v28  ;;  %v3472_v28 = vld [vmem:[%s6418_s9 + $0x78] sm:$0xff] }
 0x493   : > { %4201 = vmatprep.subr.bf16.mxu1 %v4480_v15  ;;  %v4216_v29 = vpack.c.bf16 %v3472_v28, %v3471_v26  ;;  %v2879_v28 = vld [vmem:[%s6420_s11 + $0x10] sm:$0xff] }
 0x496   : > { %4204 = vmatpush1.bf16.msk.msra.mxu1 %vm4203_vm12, %v4202_v31  ;;  %v3474_v31 = vld [vmem:[%s6418_s9 + $0x88] sm:$0xff] }
 0x497   : > { %4205 = vmatprep.subr.bf16.mxu1 %v4480_v15  ;;  %v4219_v8 = vpack.c.bf16 %v3474_v31, %v3473_v30  ;;  %v2881_v30 = vld [vmem:[%s6420_s11 + $0x20] sm:$0xff]  ;;  %v2882_v31 = vld [vmem:[%s6420_s11 + $0x28] sm:$0xff] }
 0x544   : > { %v2201_v36 = vpop.f32.mrb[10].mxu1 }
 0x545   : > { %v2228_v37 = vadd.f32 %v2221_v34, %v2201_v36  ;;  %v2203_v41 = vpop.f32.mrb[11].mxu1 }
 0x546   : > { %v2229_v42 = vadd.f32 %v2225_v35, %v2203_v41  ;;  %v2452_v41 = vld [vmem:[%s6418_s9 + $0x8] sm:$0xff] }
 0x547   : > { %v2232_v43 = vmax.f32 %v2228_v37, 0.0  ;;  %v2451_v37 = vld [vmem:[%s6418_s9] sm:$0xff] }
 0x548   : > { %v2233_v38 = vmax.f32 %v2229_v42, 0.0  ;;  %v2207_v49 = vpop.f32.mrb[12].mxu1  ;;  %v3501_v42 = vld [vmem:[%s6418_s9 + $0x140] sm:$0xff] }
 0x549   : > { %v2230_v50 = vadd.f32 %v2221_v34, %v2207_v49  ;;  %2240 = vrot.lane.b32.xlu0 %v2232_v43, %s4482_s25  ;;  %v2209_v52 = vpop.f32.mrb[13].mxu1  ;;  %v3475_v34 = vld [vmem:[%s6418_s9 + $0x90] sm:$0xff]  ;;  %v4225_v49 = vpack.c.bf16 %v2452_v41, %v2451_v37  ;;  %v2885_v37 = vld [vmem:[%s6420_s11 + $0x40] sm:$0xff]  ;;  %v2886_v41 = vld [vmem:[%s6420_s11 + $0x48] sm:$0xff] }
 0x54a   : > { %v2231_v54 = vadd.f32 %v2225_v35, %v2209_v52  ;;  %2242 = vrot.lane.b32.xlu1 %v2233_v38, %s4482_s25  ;;  %v3476_v35 = vld [vmem:[%s6418_s9 + $0x98] sm:$0xff]  ;;  %v2453_v52 = vld [vmem:[%s6418_s9 + $0x10] sm:$0xff] }
 0x54b   : > { %v2234_v56 = vmax.f32 %v2230_v50, 0.0  ;;  %v4222_v36 = vpack.c.bf16 %v3476_v35, %v3475_v34  ;;  %v2883_v34 = vld [vmem:[%s6420_s11 + $0x30] sm:$0xff]  ;;  %v2884_v35 = vld [vmem:[%s6420_s11 + $0x38] sm:$0xff] }
 0x54c   : > { %v2235_v57 = vmax.f32 %v2231_v54, 0.0 }
 0x54d   : > { %2244 = vrot.lane.b32.xlu0 %v2234_v56, %s4482_s25 }
 0x54e   : > { %2246 = vrot.lane.b32.xlu1 %v2235_v57, %s4482_s25  ;;  %s485_s25 = sand.u32 1, %s4470_s19  }
 0x54f   : > { %s486_s20 = scalar_lea.vmem [#allocation2], %s485_s25  ;;  %s3061_s30 = scalar_lea.sflag [#allocation3], %s485_s25 }
 0x550   : > { %s3073_s24 = sshll.u32 %s486_s20, 4  ;;  %s6368_s24 = int_to_ptr.vmem [resolvable:$true] %s3073_s24 }
 0x551   : > { %s4416_s21 = scalar_lea.vmem %s6368_s24, 16  ;;  %p4423_p0 = scmp.lt.s32.totalorder %s6368_s24, %s4421_s16 }
 0x552   : > { %p4417_p11 = scmp.ne.s32.totalorder %s6368_s24, %s4416_s21  ;;  %p4424_p1 = scmp.lt.s32.totalorder %s4422_s17, %s4416_s21 }
 0x554   : > { %p4418_p12 = pnand %p4417_p11, %p4604_p5  ;;  %p4425_p2 = por %p4424_p1, %p4423_p0 }
 0x556   : > { %p4419_p13 = pneg %p4418_p12 }
 0x558   : > { %p4426_p3 = pnand %p4425_p2, %p4419_p13 }
 0x5bb   : > { %v2241_v47 = vpop.permute.xlu0 %2240 }
 0x5bc   : > { %v2243_v51 = vpop.permute.xlu1 %2242 }
 0x5bd   : > { %v2248_v53 = vsel %vm1390_vm5, %v2241_v47, %v2243_v51  ;;  %v2255_v0 = vmax.f32 %v2233_v38, %v2243_v51  ;;  %v3503_v47 = vld [vmem:[%s6418_s9 + $0x150] sm:$0xff]  ;;  %v3504_v51 = vld [vmem:[%s6418_s9 + $0x158] sm:$0xff] }
 0x5be   : > { %v2254_v58 = vmax.f32 %v2232_v43, %v2248_v53  ;;  %v3502_v43 = vld [vmem:[%s6418_s9 + $0x148] sm:$0xff] }
 0x5bf   : > { %3463 = vmatprep.mubr.msk.f32.mxu1 %vm2278_vm13, %v2255_v0  ;;  %v2245_v59 = vpop.permute.xlu0 %2244  ;;  %v4270_v50 = vpack.c.bf16 %v3502_v43, %v3501_v42  ;;  %v4297_v42 = vpack.c.bf16 %v2886_v41, %v2885_v37  ;;  %v2887_v43 = vld [vmem:[%s6420_s11 + $0x50] sm:$0xff] }
 0x5c0   : > { %2353 = vmatmul.mubr.f32.vlgmr.msra.gmra.mrb[14].mxu1 %v2254_v58  ;;  %v2247_v60 = vpop.permute.xlu1 %2246  ;;  %v4273_v58 = vpack.c.bf16 %v3504_v51, %v3503_v47  ;;  %v2965_v51 = vld [vmem:[%s6422_s13] sm:$0xff] }
 0x5c1   : > { %v2249_v61 = vsel %vm1390_vm5, %v2245_v59, %v2247_v60  ;;  %v2257_v62 = vmax.f32 %v2235_v57, %v2247_v60  ;;  %v2454_v57 = vld [vmem:[%s6418_s9 + $0x18] sm:$0xff]  ;;  %v2455_v59 = vld [vmem:[%s6418_s9 + $0x20] sm:$0xff]  ;;  %v2456_v60 = vld [vmem:[%s6418_s9 + $0x28] sm:$0xff] }
 0x5c2   : > { %v2256_v45 = vmax.f32 %v2234_v56, %v2249_v61  ;;  %v4228_v0 = vpack.c.bf16 %v2454_v57, %v2453_v52  ;;  %v3505_v61 = vld [vmem:[%s6418_s9 + $0x160] sm:$0xff]  ;;  %v2890_v52 = vld [vmem:[%s6420_s11 + $0x68] sm:$0xff]  ;;  %v2892_v57 = vld [vmem:[%s6420_s11 + $0x78] sm:$0xff] }
 0x5c3   : > { %3464 = vmatprep.mubr.msk.f32.mxu1 %vm2278_vm13, %v2257_v62  ;;  %v3506_v62 = vld [vmem:[%s6418_s9 + $0x168] sm:$0xff] }
 0x5c4   : > { %2358 = vmatmul.mubr.f32.gmra.mrb[16].mxu1 %v2256_v45  ;;  %v4231_v45 = vpack.c.bf16 %v2456_v60, %v2455_v59  ;;  %v4276_v1 = vpack.c.bf16 %v3506_v62, %v3505_v61  ;;  %v2968_v59 = vld [vmem:[%s6422_s13 + $0x18] sm:$0xff]  ;;  %v2969_v61 = vld [vmem:[%s6422_s13 + $0x20] sm:$0xff]  ;;  %v2970_v62 = vld [vmem:[%s6422_s13 + $0x28] sm:$0xff] }
 0x5c5   : > { %3622 = vmatprep.mubr.msk.f32.mxu1 %vm4484_vm14, %v4481_v55 }
 0x693   : > { %v2354_v12 = vpop.f32.mrb[14].mxu1 }
 0x694   : > { %v2356_v13 = vpop.f32.mrb[15].mxu1  ;;  %v2365_v24 = vrot.slane %v2354_v12, 1 }
 0x697   : > { %v2359_v16 = vpop.f32.mrb[16].mxu1 }
 0x698   : > { %v2366_v33 = vrot.slane %v2359_v16, 1  ;;  %v2361_v63 = vpop.f32.mrb[17].mxu1 }
 0x699   : > { %v3494_v63 = vld [vmem:[%s6418_s9 + $0x110] sm:$0xff] }
 0x69a   : > { %v2367_v27 = vsel %vm605_vm0, %v2365_v24, %v2366_v33  ;;  %v2371_v39 = vmax.f32 %v2359_v16, %v2366_v33  ;;  %vm2474_vm0 = vcmask 654336   ;;  %v3492_v16 = vld [vmem:[%s6418_s9 + $0x100] sm:$0xff]  ;;  %v3493_v24 = vld [vmem:[%s6418_s9 + $0x108] sm:$0xff] }
 0x69b   : > { %v2370_v18 = vmax.f32 %v2354_v12, %v2367_v27  ;;  %v4255_v12 = vpack.c.bf16 %v3491_v17, %v3490_v48  ;;  %v4258_v33 = vpack.c.bf16 %v3493_v24, %v3492_v16  ;;  %v3495_v27 = vld [vmem:[%s6418_s9 + $0x118] sm:$0xff]  ;;  %v2874_v48 = vld [vmem:[%s6419_s10] sm:$0x1] }
 0x69c   : > { %v2972_v16 = vld [vmem:[%s6422_s13 + $0x38] sm:$0xff] }
 0x69d   : > { %v4206_v44 = vpack.c.bf16 %v2371_v39, %v2370_v18  ;;  %v4261_v39 = vpack.c.bf16 %v3495_v27, %v3494_v63  ;;  %v3496_v18 = vld [vmem:[%s6418_s9 + $0x120] sm:$0xff] }
 0x69e   : > { %v4264_v20 = vpack.c.bf16 %v3497_v19, %v3496_v18  ;;  %v2973_v19 = vld [vmem:[%s6423_s14] sm:$0x1] }
 0x69f   : > { %4208 = vmatpush3.bf16.msk.msra.mxu1 %vm4207_vm2, %v4206_v44  ;;  %v3498_v44 = vld [vmem:[%s6418_s9 + $0x130] sm:$0xff] }
 0x6a0   : > { %4209 = vmatprep.subr.bf16.mxu1 %v4480_v15 }
 0x6a2   : > { %3623 = vmatmul.mubr.msk.f32.vlgmr.msra.gmra.mrb[18].mxu1 %vm2373_vm3, %v2372_v32  ;;  %v3499_v32 = vld [vmem:[%s6418_s9 + $0x138] sm:$0xff] }
 0x6a3   : > { %4211 = vmatpush3.bf16.msra.mxu1 %v4210_v21  ;;  %3645 = vmatprep.mubr.msk.f32.mxu1 %vm4484_vm14, %v4481_v55  ;;  %v4267_v21 = vpack.c.bf16 %v3499_v32, %v3498_v44 }
 0x6a4   : > { %4212 = vmatprep.subr.bf16.mxu1 %v4480_v15 }
 0x6a7   : > { %4214 = vmatpush3.bf16.msra.mxu1 %v4213_v25  ;;  %v2878_v25 = vld [vmem:[%s6420_s11 + $0x8] sm:$0xff] }
 0x6a8   : > { %4215 = vmatprep.subr.bf16.mxu1 %v4480_v15  ;;  %v4285_v26 = vpack.c.bf16 %v2878_v25, %v2877_v23 }
 0x6ab   : > { %4217 = vmatpush3.bf16.msra.mxu1 %v4216_v29 }
 0x6ac   : > { %4218 = vmatprep.subr.bf16.mxu1 %v4480_v15 }
 0x6af   : > { %4220 = vmatpush3.bf16.msra.mxu1 %v4219_v8  ;;  %v4291_v8 = vpack.c.bf16 %v2882_v31, %v2881_v30 }
 0x6b0   : > { %4221 = vmatprep.subr.bf16.mxu1 %v4480_v15 }
 0x6b3   : > { %4223 = vmatpush3.bf16.msra.mxu1 %v4222_v36  ;;  %v4294_v36 = vpack.c.bf16 %v2884_v35, %v2883_v34 }
 0x6b4   : > { %4224 = vmatprep.subr.bf16.mxu1 %v4480_v15 }
 0x775   : > { %v6152_v38 = vpop.f32.mrb[18].mxu1 }
 0x776   : > { %v2473_v54 = vrot.slane %v6152_v38, 1  ;;  %v2630_v56 = vrot.slane %v6152_v38, 2  ;;  %v3624_v53 = vpop.f32.mrb[19].mxu1  ;;  %v2800_v13 = vrot.slane %v6152_v38, 4  ;;  %v2715_v22 = vrot.slane %v6152_v38, 3 }
 0x777   : > { %v2966_v53 = vld [vmem:[%s6422_s13 + $0x8] sm:$0xff] }
 0x778   : > { %3646 = vmatmul.mubr.msk.f32.vlgmr.msra.gmra.mrb[20].mxu1 %vm2474_vm0, %v2473_v54  ;;  %3692 = vmatmul.mubr.msk.f32.vlgmr.msra.gmra.mrb[8].mxu0 %vm2474_vm0, %v2630_v56  ;;  %v2891_v56 = vld [vmem:[%s6420_s11 + $0x70] sm:$0xff] }
 0x779   : > { %4226 = vmatpush3.bf16.msra.mxu1 %v4225_v49  ;;  %4271 = vmatpush3.bf16.msra.mxu0 %v4270_v50  ;;  %v2889_v50 = vld [vmem:[%s6420_s11 + $0x60] sm:$0xff]  ;;  %v4306_v47 = vpack.c.bf16 %v2892_v57, %v2891_v56 }
 0x77a   : > { %4227 = vmatprep.subr.bf16.mxu1 %v4480_v15  ;;  %4272 = vmatprep.subr.bf16.mxu0 %v4480_v15  ;;  %v4303_v54 = vpack.c.bf16 %v2890_v52, %v2889_v50 }
 0x77b   : > { %3668 = vmatprep.mubr.msk.f32.mxu1 %vm4484_vm14, %v4481_v55  ;;  %3737 = vmatprep.mubr.msk.f32.mxu0 %vm4484_vm14, %v4481_v55 }
 0x77d   : > { %4229 = vmatpush3.bf16.msra.mxu1 %v4228_v0  ;;  %4274 = vmatpush3.bf16.msra.mxu0 %v4273_v58  ;;  %v2967_v0 = vld [vmem:[%s6422_s13 + $0x10] sm:$0xff]  ;;  %v4309_v58 = vpack.c.bf16 %v2966_v53, %v2965_v51 }
 0x77e   : > { %4230 = vmatprep.subr.bf16.mxu1 %v4480_v15  ;;  %4275 = vmatprep.subr.bf16.mxu0 %v4480_v15  ;;  %v4312_v60 = vpack.c.bf16 %v2968_v59, %v2967_v0 }
 0x781   : > { %4232 = vmatpush3.bf16.msra.mxu1 %v4231_v45  ;;  %4277 = vmatpush3.bf16.msra.mxu0 %v4276_v1  ;;  %v4315_v45 = vpack.c.bf16 %v2970_v62, %v2969_v61 }
 0x782   : > { %4233 = vmatprep.subr.bf16.mxu1 %v4480_v15  ;;  %4278 = vmatprep.subr.bf16.mxu0 %v4480_v15 }
 0x785   : > { %4235 = vmatpush3.bf16.msra.mxu1 %v4234_v6  ;;  %4280 = vmatpush3.bf16.msra.mxu0 %v4279_v7 }
 0x786   : > { %4236 = vmatprep.subr.bf16.mxu1 %v4480_v15  ;;  %4281 = vmatprep.subr.bf16.mxu0 %v4480_v15 }
 0x789   : > { %4238 = vmatpush3.bf16.msra.mxu1 %v4237_v14  ;;  %4283 = vmatpush3.bf16.msra.mxu0 %v4282_v40 }
 0x78a   : > { %4254 = vmatprep.subr.bf16.mxu1 %v4480_v15  ;;  %4308 = vmatprep.subr.bf16.mxu0 %v4480_v15 }
 0x78c   : > { %3669 = vmatmul.mubr.msk.f32.vlgmr.msra.gmra.mrb[22].mxu1 %vm2474_vm0, %v6152_v38  ;;  %3738 = vmatmul.mubr.msk.f32.vlgmr.msra.gmra.mrb[10].mxu0 %vm2474_vm0, %v2800_v13  ;;  %v2888_v38 = vld [vmem:[%s6420_s11 + $0x58] sm:$0xff]  ;;  %v2971_v13 = vld [vmem:[%s6422_s13 + $0x30] sm:$0xff] }
 0x78d   : > { %4256 = vmatpush3.bf16.msra.mxu1 %v4255_v12  ;;  %3714 = vmatprep.mubr.msk.f32.mxu1 %vm4484_vm14, %v4481_v55  ;;  %v4300_v49 = vpack.c.bf16 %v2888_v38, %v2887_v43  ;;  %v4318_v24 = vpack.c.bf16 %v2972_v16, %v2971_v13 }
 0x78e   : > { %4257 = vmatprep.subr.bf16.mxu1 %v4480_v15  ;;  %3791 = vmatprep.mubr.msk.f32.mxu0 %vm4484_vm14, %v4481_v55 }
 0x78f   : > { %4310 = vmatpush3.bf16.msra.mxu0 %v4309_v58 }
 0x790   : > { %4311 = vmatprep.subr.bf16.mxu0 %v4480_v15 }
 0x791   : > { %4259 = vmatpush3.bf16.msra.mxu1 %v4258_v33  ;;  %v2893_v33 = vld [vmem:[%s6421_s12] sm:$0x1] }
 0x792   : > { %4260 = vmatprep.subr.bf16.mxu1 %v4480_v15 }
 0x793   : > { %4313 = vmatpush3.bf16.msra.mxu0 %v4312_v60 }
 0x794   : > { %4314 = vmatprep.subr.bf16.mxu0 %v4480_v15 }
 0x795   : > { %4262 = vmatpush3.bf16.msra.mxu1 %v4261_v39 }
 0x796   : > { %4263 = vmatprep.subr.bf16.mxu1 %v4480_v15 }
 0x797   : > { %4316 = vmatpush3.bf16.msra.mxu0 %v4315_v45 }
 0x798   : > { %4317 = vmatprep.subr.bf16.mxu0 %v4480_v15 }
 0x799   : > { %4265 = vmatpush3.bf16.msra.mxu1 %v4264_v20 }
 0x79a   : > { %4266 = vmatprep.subr.bf16.mxu1 %v4480_v15 }
 0x79b   : > { %4319 = vmatpush3.bf16.msra.mxu0 %v4318_v24 }
 0x79d   : > { %4268 = vmatpush3.bf16.msra.mxu1 %v4267_v21 }
 0x79e   : > { %4284 = vmatprep.subr.bf16.mxu1 %v4480_v15 }
 0x7a0   : > { %3715 = vmatmul.mubr.msk.f32.vlgmr.msra.gmra.mrb[24].mxu1 %vm2474_vm0, %v2715_v22 }
 0x7a1   : > { %3772 = vmatprep.mubr.msk.f32.mxu1 %vm4484_vm14, %v4481_v55  ;;  %4286 = vmatpush3.bf16.msra.mxu1 %v4285_v26  ;;  %v2880_v55 = vld [vmem:[%s6420_s11 + $0x18] sm:$0xff] }
 0x7a2   : > { %4287 = vmatprep.subr.bf16.mxu1 %v4480_v15  ;;  %v4288_v29 = vpack.c.bf16 %v2880_v55, %v2879_v28 }
 0x7a5   : > { %4289 = vmatpush3.bf16.msra.mxu1 %v4288_v29 }
 0x7a6   : > { %4290 = vmatprep.subr.bf16.mxu1 %v4480_v15 }
 0x7a9   : > { %4292 = vmatpush3.bf16.msra.mxu1 %v4291_v8 }
 0x7aa   : > { %4293 = vmatprep.subr.bf16.mxu1 %v4480_v15 }
 0x7ad   : > { %4295 = vmatpush3.bf16.msra.mxu1 %v4294_v36 }
 0x7ae   : > { %4296 = vmatprep.subr.bf16.mxu1 %v4480_v15 }
 0x7b1   : > { %4298 = vmatpush3.bf16.msra.mxu1 %v4297_v42 }
 0x7b2   : > { %4299 = vmatprep.subr.bf16.mxu1 %v4480_v15 }
 0x7b5   : > { %4301 = vmatpush3.bf16.msra.mxu1 %v4300_v49 }
 0x7b6   : > { %4302 = vmatprep.subr.bf16.mxu1 %v4480_v15 }
 0x7b9   : > { %4304 = vmatpush3.bf16.msra.mxu1 %v4303_v54 }
 0x7ba   : > { %4305 = vmatprep.subr.bf16.mxu1 %v4480_v15 }
 0x7bd   : > { %4307 = vmatpush3.bf16.msra.mxu1 %v4306_v47 }
 0x84b   : > { %v2543_v1 = vpop.f32.mrb[20].mxu1  ;;  %v2699_v2 = vpop.f32.mrb[8].mxu0 }
 0x84c   : > { %v3647_v3 = vpop.f32.mrb[21].mxu1  ;;  %v3693_v4 = vpop.f32.mrb[9].mxu0 }
 0x85f   : > { %v2615_v5 = vpop.f32.mrb[22].mxu1  ;;  %v2869_v6 = vpop.f32.mrb[10].mxu0 }
 0x860   : > { %v2616_v7 = vadd.f32 %v2615_v5, %v2543_v1  ;;  %v3670_v9 = vpop.f32.mrb[23].mxu1  ;;  %v3739_v10 = vpop.f32.mrb[11].mxu0 }
 0x862   : > { %v2703_v46 = vadd.f32 %v2699_v2, %v2616_v7 }
 0x873   : > { %v2784_v11 = vpop.f32.mrb[24].mxu1 }
 0x874   : > { %v2788_v14 = vadd.f32 %v2784_v11, %v2703_v46  ;;  %v3716_v40 = vpop.f32.mrb[25].mxu1 }
 0x876   : > { %v2873_v17 = vadd.f32 %v2869_v6, %v2788_v14 }
 0x878   : > { %v2875_v12 = vadd.f32 %v2874_v48, %v2873_v17 }
 0x87a   : > { %v2876_v15 = vmax.f32 %v2875_v12, 0.0 }
 0x87c   : > { %3773 = vmatmul.mubr.f32.vlgmr.msra.gmra.mrb[26].mxu1 %v2876_v15 }
 0x94f   : > { %v2960_v63 = vpop.f32.mrb[26].mxu1 }
 0x950   : > { %v2961_v27 = vadd.f32 %v2960_v63, %v2893_v33  ;;  %v3774_v39 = vpop.f32.mrb[27].mxu1 }
 0x952   : > { %v2964_v18 = vmax.f32 %v2961_v27, 0.0 }
 0x954   : > { %3792 = vmatmul.mubr.msk.f32.vlgmr.msra.gmra.mrb[12].mxu0 %vm624_vm1, %v2964_v18 }
 0xa27   : > { %v3043_v20 = vpop.f32.mrb[12].mxu0 }
 0xa28   : > { %v3044_v44 = vadd.f32 %v3043_v20, %v2973_v19  ;;  %v3793_v32 = vpop.f32.mrb[13].mxu0 }
 0xa2a   : > { %v3048_v21 = vsel %vm3047_vm4, %v3044_v44, -inf }
 0xa2b   : > { %3049 = vmax.xlane.f32.xlu0 %v3048_v21 }
 0xab8   : > { %v3050_v22 = vpop.xlane.xlu0 %3049 }
 0xab9   : > { %v3051_v23 = vsub.f32 %v3044_v44, %v3050_v22 }
 0xabb   : > { %v3052_v25 = vmul.f32 1.442695, %v3051_v23 }
 0xabd   : > { %4412 = vpow2.f32 %v3052_v25 }
 0xac7   : > { %v4413_v26 = vpop.eup %4412 }
 0xac8   : > { %v3054_v28 = vsel %vm3047_vm4, %v4413_v26, 0.0 }
 0xac9   : > { %3055 = vadd.xlane.f32.xlu1 %v3054_v28 }
 0xb56   : > { %v3056_v55 = vpop.xlane.xlu1 %3055 }
 0xb57   : > { %4414 = vrcp.f32 %v3056_v55 }
 0xb61   : > { %v4415_v29 = vpop.eup %4414 }
 0xb62   : > { %v3058_v30 = vmul.f32 %v4415_v29, %v4413_v26 }
 0xb64   : > { %3059 = vst.msk [vmem:[%s486_s20] sm:$0x1] %vm3047_vm4, %v3058_v30 }
 0xb65   : > { %4429 = shalt.err (!%p4426_p3)
}
 0xb66   : > { %s4430_s23 = scalar_lea.hbm %s6366_s29, 16  ;;  %s4434_s20 = scalar_lea.hbm %s6424_s15, 32 }
 0xb67   : > { %p4431_p4 = scmp.ne.s32.totalorder %s6366_s29, %s4430_s23  ;;  %p4435_p9 = scmp.lt.u32.totalorder %s6366_s29, %s6424_s15 }
 0xb68   : > { %p4436_p10 = scmp.lt.u32.totalorder %s4434_s20, %s4430_s23  ;;  %p4438_p12 = scmp.lt.u32.totalorder %s4430_s23, %s6366_s29 }
 0xb69   : > { %p4432_p7 = pnand %p4431_p4, %p4604_p5 }
 0xb6a   : > { %p4437_p11 = por %p4436_p10, %p4435_p9 }
 0xb6b   : > { %p4433_p8 = pneg %p4432_p7 }
 0xb6c   : > { %p4439_p13 = por %p4438_p12, %p4437_p11 }
 0xb6e   : > { %p4440_p0 = pnand %p4439_p13, %p4433_p8 }
 0xb70   : > { %4443 = shalt.err (!%p4440_p0)
}
 0xb71   : > { %4368 = dma.vmem_to_hbm [thread:$0]  (%p4604_p5), %s6368_s24, 16, %s6366_s29, %s3061_s30  }
 0xb72 PF: > { %s6439_s21 = sld [smem:[#allocation7_spill]]  ;;  %s6440_s22 = sld [smem:[#allocation5_spill]] }
 0xb78   : > { %p4374_p1 = scmp.ge.s32.totalorder %s6439_s21, 2  ;;  %s3085_s17 = sand.u32 1, %s6440_s22  }
 0xb79   : > { %s3086_s25 = scalar_lea.sflag [#allocation3], %s3085_s17 }
 0xb7a   : > { %p4371_p2 = pnand %p4374_p1, %p4608_p6 }
 0xb7c   : > { %4461 = dma.done.wait (!%p4371_p2), %s3086_s25, 16  }
 0xb7d   : > { %4463 = vsyncadd (!%p4371_p2), %s3086_s25, 4294967280  ;;  %s6442_s21 = sld [smem:[#allocation8_spill]]  ;;  %s6443_s23 = sld [smem:[#allocation6_spill]] }
 0xb7e   : > { %s6444_s20 = sld [smem:[#allocation9_spill]]  ;;  %s6445_s18 = smov %s4470_s19 }
 0xb83   : > { %p25_p3 = scmp.ge.s32.totalorder %s6442_s21, 4   ;;  %s6446_s19 = smov %s6443_s23 }
 0xb85   :  { %27 = sbr.rel (!%p25_p3) target bundleno = 3 (0x3), region = 127 }
 0xb8c   :  { %3090 = vsyncpa [#allocation3], 1 }
 0xb8d   :  { %3092 = vsyncpa [#allocation3 + $0x1], 1 }

</bundles_post_ra>
